<compile_context>
chip_gen: v7x
topology: tpu7x:2x2x1
jax: 0.10.0
libtpu: 0.0.40
codegen_flags: <defaults>
</compile_context>

<pallas_src>
import functools

import jax
import jax.numpy as jnp
from jax.experimental import pallas as pl
from jax.experimental.pallas import tpu as pltpu


# ----------------------------- Pallas kernel ------------------------------ #
def _whvi_net_kernel(x_ref, g1_ref, g2_ref, hb0_ref, hb1_ref, hb2_ref, hb3_ref,
                     out_ref):
    """One row-tile of all Monte-Carlo samples: 4 batched matmuls total.

    x_ref  : (TM, L)  input rows, tiled P times along lanes (L = P*D), one row
                      per (group, batch) pair
    g1_ref : (TM, L)  per-sample diagonal of layer 1 (g_mu + g_sigma * eps)
    g2_ref : (TM, L)  per-sample diagonal of layer 2
    hb*_ref: (L, L)   pre-scaled block-diagonal Hadamard operands
    out_ref: (TM, L)  lane-dense packed output
    """
    dot = functools.partial(jnp.dot, preferred_element_type=jnp.float32,
                            precision=jax.lax.Precision.HIGHEST)
    # Each (pre-scaled) Hadamard ref is read at its use site so Mosaic can
    # stream the RHS from VMEM per matmul instead of pinning vregs across ops.
    a = dot(x_ref[...], hb0_ref[...])                          # (x*s2a) @ H
    h = jnp.maximum(dot(a * g1_ref[...], hb1_ref[...]), 0.0)   # relu(((.)*g1)@H*s1a)
    u = dot(h, hb2_ref[...]) * g2_ref[...]                     # ((h*s2b)@H)*g2
    out_ref[...] = dot(u, hb3_ref[...])                        # (.)@H*s1b


# ------------------------------- Wrapper ----------------------------------- #
def hadamard_matrix(n: int) -> jnp.ndarray:
    """Normalized Sylvester-Hadamard matrix (n must be a power of two)."""
    h = jnp.array([[1.0]], dtype=jnp.float32)
    while h.shape[0] < n:
        h = jnp.block([[h, h], [h, -h]])
    return h / jnp.sqrt(jnp.float32(n))


def _default_lane_target() -> int:
    """256 lanes match the v6e/v7x 256-wide MXU tile; 128 fills v5e's MXU."""
    try:
        kind = jax.devices()[0].device_kind.lower()
    except Exception:
        return 128
    # v7x reports 'TPU7x' (no 'v7' substring); v6e reports 'TPU v6e'/'v6 lite'.
    if any(tag in kind for tag in ("v6", "v7", "tpu7", "7x")):
        return 256
    return 128


def _row_tiling(rows: int):
    """Sublane-aligned row tile (multiple of 8) and padded row count."""
    if rows <= 512:
        tm = max(8, ((rows + 7) // 8) * 8)
        return tm, tm
    tm = 256
    return tm, ((rows + tm - 1) // tm) * tm


@functools.partial(jax.jit, static_argnames=("pack",))
def _whvi_forward_impl(x, params, eps, pack):
    batch, dim = x.shape
    n_samples = eps.shape[0]
    n_groups = n_samples // pack
    lanes = pack * dim
    rows = n_groups * batch
    tm, rows_pad = _row_tiling(rows)
    f32 = jnp.float32

    # Block-diagonal normalized Hadamard: `pack` samples share the lane axis.
    h = hadamard_matrix(dim)
    hb = jnp.kron(jnp.eye(pack, dtype=f32), h) if pack > 1 else h

    def lane(p):  # (1, D) parameter -> (L,) lane-packed vector
        return jnp.tile(params[p].astype(f32).reshape(-1), pack)

    s1a, s2a, s1b, s2b = lane("s1_a"), lane("s2_a"), lane("s1_b"), lane("s2_b")
    gmua, gsga = lane("g_mu_a"), lane("g_sigma_a")
    gmub, gsgb = lane("g_mu_b"), lane("g_sigma_b")

    # Fold the sample-invariant diagonal scales into the Hadamard operands:
    #   (v * s) @ H == v @ (diag(s) H)   and   (v @ H) * s == v @ (H diag(s))
    hb0 = s2a[:, None] * hb       # layer-1 input scale + first H
    hb1 = hb * s1a[None, :]       # layer-1 second H + output scale
    hb2 = s2b[:, None] * hb       # layer-2 input scale + first H
    hb3 = hb * s1b[None, :]       # layer-2 second H + output scale

    # Per-sample diagonals g = g_mu + g_sigma * eps, expanded to one row per
    # (group, batch) pair so the kernel runs 4 dense (rows, L)@(L, L) matmuls.
    eps1 = eps[:, 0, :].astype(f32).reshape(n_groups, lanes)   # (G, L)
    eps2 = eps[:, 1, :].astype(f32).reshape(n_groups, lanes)   # (G, L)
    g1 = jnp.repeat(gmua[None, :] + gsga[None, :] * eps1, batch, axis=0)
    g2 = jnp.repeat(gmub[None, :] + gsgb[None, :] * eps2, batch, axis=0)
    x_rows = jnp.tile(jnp.tile(x.astype(f32), (1, pack)), (n_groups, 1))

    pad = rows_pad - rows
    if pad:
        zpad = ((0, pad), (0, 0))
        x_rows = jnp.pad(x_rows, zpad)
        g1 = jnp.pad(g1, zpad)
        g2 = jnp.pad(g2, zpad)

    row_spec = pl.BlockSpec((tm, lanes), lambda i: (i, 0))
    had_spec = pl.BlockSpec((lanes, lanes), lambda i: (0, 0))

    out_packed = pl.pallas_call(
        _whvi_net_kernel,
        out_shape=jax.ShapeDtypeStruct((rows_pad, lanes), f32),
        grid_spec=pltpu.PrefetchScalarGridSpec(
            num_scalar_prefetch=0,
            grid=(rows_pad // tm,),
            in_specs=[row_spec, row_spec, row_spec,
                      had_spec, had_spec, had_spec, had_spec],
            out_specs=row_spec,
        ),
        compiler_params=pltpu.CompilerParams(
            dimension_semantics=("parallel",)),
    )(x_rows, g1, g2, hb0, hb1, hb2, hb3)

    # Unpack (G*B, P*D) -> (B, D, n_samples) with sample index s = g*P + p.
    out = out_packed[:rows].reshape(n_groups, batch, pack, dim)
    out = jnp.transpose(out, (1, 3, 0, 2))
    return out.reshape(batch, dim, n_groups * pack)


def whvi_network_forward(x, params, eps, lane_target=None):
    """
    x:      (B, D) float32
    params: dict of (1, D) diagonal parameters for the two WHVI layers
    eps:    (n_samples, 2, D) standard-normal draws (one per layer per sample)
    returns (B, D, n_samples)  -- PyTorch's (batch, out_dim, n_samples)
    """
    _, dim = x.shape
    n_samples = eps.shape[0]
    if lane_target is None:
        lane_target = _default_lane_target()
    pack = max(1, min(lane_target // dim, n_samples))
    while n_samples % pack:
        pack -= 1
    return _whvi_forward_impl(x, params, eps, pack)


# --------------------------------- Test ------------------------------------ #
if __name__ == "__main__":
    B, D = 8, 32            # batch_size, in_dim == out_dim of the WHVI stack
    n_samples = 16          # eval-mode Monte Carlo samples (self.eval_samples)

    keys = jax.random.split(jax.random.PRNGKey(0), 8)
    x = jax.random.normal(keys[0], (B, D), dtype=jnp.float32)
    eps = jax.random.normal(keys[1], (n_samples, 2, D), dtype=jnp.float32)

    params = {
        "s1_a": 1.0 + 0.1 * jax.random.normal(keys[2], (1, D), dtype=jnp.float32),
        "s2_a": 1.0 + 0.1 * jax.random.normal(keys[3], (1, D), dtype=jnp.float32),
        "g_mu_a": 0.1 * jax.random.normal(keys[4], (1, D), dtype=jnp.float32),
        "g_sigma_a": jnp.full((1, D), 0.05, dtype=jnp.float32),
        "s1_b": 1.0 + 0.1 * jax.random.normal(keys[5], (1, D), dtype=jnp.float32),
        "s2_b": 1.0 + 0.1 * jax.random.normal(keys[6], (1, D), dtype=jnp.float32),
        "g_mu_b": 0.1 * jax.random.normal(keys[7], (1, D), dtype=jnp.float32),
        "g_sigma_b": jnp.full((1, D), 0.05, dtype=jnp.float32),
    }

    y = whvi_network_forward(x, params, eps)
    y = jax.block_until_ready(y)
    assert y.shape == (B, D, n_samples), y.shape

    # Pure-JAX per-sample reference check (same f32 matmul precision).
    H = hadamard_matrix(D)
    rdot = functools.partial(jnp.dot, precision=jax.lax.Precision.HIGHEST)

    def ref_sample(e):
        g1 = params["g_mu_a"] + params["g_sigma_a"] * e[0:1]
        g2 = params["g_mu_b"] + params["g_sigma_b"] * e[1:2]
        h = rdot(x * params["s2_a"], H) * g1
        h = jnp.maximum(rdot(h, H) * params["s1_a"], 0.0)
        o = rdot(h * params["s2_b"], H) * g2
        return rdot(o, H) * params["s1_b"]

    ref = jnp.stack([ref_sample(eps[s]) for s in range(n_samples)], axis=-1)
    err = float(jnp.max(jnp.abs(y - ref)))
    assert jnp.allclose(y, ref, atol=1e-4, rtol=1e-4), err

    print("KERNEL_OK")
</pallas_src>

<mosaic_0001>
module attributes {stable_mosaic.version = 11 : i64} {
  func.func @_whvi_net_kernel(%arg0: i32, %arg1: memref<32x128xf32, #tpu.memory_space<vmem>>, %arg2: memref<32x128xf32, #tpu.memory_space<vmem>>, %arg3: memref<32x128xf32, #tpu.memory_space<vmem>>, %arg4: memref<128x128xf32, #tpu.memory_space<vmem>>, %arg5: memref<128x128xf32, #tpu.memory_space<vmem>>, %arg6: memref<128x128xf32, #tpu.memory_space<vmem>>, %arg7: memref<128x128xf32, #tpu.memory_space<vmem>>, %arg8: memref<32x128xf32, #tpu.memory_space<vmem>>) attributes {dimension_semantics = [#tpu.dimension_semantics<parallel>], iteration_bounds = array<i64: 1>, scalar_prefetch = 0 : i64, scratch_operands = 0 : i64, tpu.core_type = #tpu.core_type<tc>, window_params = [{transform_indices = @transform_0, window_bounds = array<i64: 32, 128>}, {transform_indices = @transform_1, window_bounds = array<i64: 32, 128>}, {transform_indices = @transform_2, window_bounds = array<i64: 32, 128>}, {pipeline_mode = #tpu.pipeline_mode<synchronous>, transform_indices = @transform_3, window_bounds = array<i64: 128, 128>}, {pipeline_mode = #tpu.pipeline_mode<synchronous>, transform_indices = @transform_4, window_bounds = array<i64: 128, 128>}, {pipeline_mode = #tpu.pipeline_mode<synchronous>, transform_indices = @transform_5, window_bounds = array<i64: 128, 128>}, {pipeline_mode = #tpu.pipeline_mode<synchronous>, transform_indices = @transform_6, window_bounds = array<i64: 128, 128>}, {transform_indices = @transform_7, window_bounds = array<i64: 32, 128>}]} {
    %c0 = arith.constant 0 : index
    %c0_0 = arith.constant 0 : index
    %0 = vector.load %arg1[%c0, %c0_0] : memref<32x128xf32, #tpu.memory_space<vmem>>, vector<32x128xf32>
    %c0_1 = arith.constant 0 : index
    %c0_2 = arith.constant 0 : index
    %1 = vector.load %arg4[%c0_1, %c0_2] : memref<128x128xf32, #tpu.memory_space<vmem>>, vector<128x128xf32>
    %cst = arith.constant dense<0.000000e+00> : vector<32x128xf32>
    %2 = tpu.matmul %0, %1, %cst {dimension_numbers = #tpu.dot_dimension_numbers<[1], [0], [0], [1], [0, 0, 1, 1], [], []>, precision = #tpu.contract_precision<fp32>} : vector<32x128xf32>, vector<128x128xf32>, vector<32x128xf32> -> vector<32x128xf32>
    %c0_3 = arith.constant 0 : index
    %c0_4 = arith.constant 0 : index
    %3 = vector.load %arg2[%c0_3, %c0_4] : memref<32x128xf32, #tpu.memory_space<vmem>>, vector<32x128xf32>
    %4 = arith.mulf %2, %3 : vector<32x128xf32>
    %c0_5 = arith.constant 0 : index
    %c0_6 = arith.constant 0 : index
    %5 = vector.load %arg5[%c0_5, %c0_6] : memref<128x128xf32, #tpu.memory_space<vmem>>, vector<128x128xf32>
    %cst_7 = arith.constant dense<0.000000e+00> : vector<32x128xf32>
    %6 = tpu.matmul %4, %5, %cst_7 {dimension_numbers = #tpu.dot_dimension_numbers<[1], [0], [0], [1], [0, 0, 1, 1], [], []>, precision = #tpu.contract_precision<fp32>} : vector<32x128xf32>, vector<128x128xf32>, vector<32x128xf32> -> vector<32x128xf32>
    %cst_8 = arith.constant 0.000000e+00 : f32
    %7 = vector.broadcast %cst_8 : f32 to vector<32x128xf32>
    %8 = arith.maximumf %6, %7 : vector<32x128xf32>
    %c0_9 = arith.constant 0 : index
    %c0_10 = arith.constant 0 : index
    %9 = vector.load %arg6[%c0_9, %c0_10] : memref<128x128xf32, #tpu.memory_space<vmem>>, vector<128x128xf32>
    %cst_11 = arith.constant dense<0.000000e+00> : vector<32x128xf32>
    %10 = tpu.matmul %8, %9, %cst_11 {dimension_numbers = #tpu.dot_dimension_numbers<[1], [0], [0], [1], [0, 0, 1, 1], [], []>, precision = #tpu.contract_precision<fp32>} : vector<32x128xf32>, vector<128x128xf32>, vector<32x128xf32> -> vector<32x128xf32>
    %c0_12 = arith.constant 0 : index
    %c0_13 = arith.constant 0 : index
    %11 = vector.load %arg3[%c0_12, %c0_13] : memref<32x128xf32, #tpu.memory_space<vmem>>, vector<32x128xf32>
    %12 = arith.mulf %10, %11 : vector<32x128xf32>
    %c0_14 = arith.constant 0 : index
    %c0_15 = arith.constant 0 : index
    %13 = vector.load %arg7[%c0_14, %c0_15] : memref<128x128xf32, #tpu.memory_space<vmem>>, vector<128x128xf32>
    %cst_16 = arith.constant dense<0.000000e+00> : vector<32x128xf32>
    %14 = tpu.matmul %12, %13, %cst_16 {dimension_numbers = #tpu.dot_dimension_numbers<[1], [0], [0], [1], [0, 0, 1, 1], [], []>, precision = #tpu.contract_precision<fp32>} : vector<32x128xf32>, vector<128x128xf32>, vector<32x128xf32> -> vector<32x128xf32>
    %c0_17 = arith.constant 0 : index
    %c0_18 = arith.constant 0 : index
    %15 = vector.load %arg8[%c0_17, %c0_18] : memref<32x128xf32, #tpu.memory_space<vmem>>, vector<32x128xf32>
    tpu.vector_store %arg8[%c0_17, %c0_18], %14 {strides = array<i32>} : memref<32x128xf32, #tpu.memory_space<vmem>>, vector<32x128xf32>,
    return
  }
  func.func @transform_0(%arg0: i32) -> (i32, i32) {
    %c0_i32 = arith.constant 0 : i32
    %c0_i32_0 = arith.constant 0 : i32
    return %arg0, %c0_i32 : i32, i32
  }
  func.func @transform_1(%arg0: i32) -> (i32, i32) {
    %c0_i32 = arith.constant 0 : i32
    %c0_i32_0 = arith.constant 0 : i32
    return %arg0, %c0_i32 : i32, i32
  }
  func.func @transform_2(%arg0: i32) -> (i32, i32) {
    %c0_i32 = arith.constant 0 : i32
    %c0_i32_0 = arith.constant 0 : i32
    return %arg0, %c0_i32 : i32, i32
  }
  func.func @transform_3(%arg0: i32) -> (i32, i32) {
    %c0_i32 = arith.constant 0 : i32
    %c0_i32_0 = arith.constant 0 : i32
    %c0_i32_1 = arith.constant 0 : i32
    return %c0_i32, %c0_i32_0 : i32, i32
  }
  func.func @transform_4(%arg0: i32) -> (i32, i32) {
    %c0_i32 = arith.constant 0 : i32
    %c0_i32_0 = arith.constant 0 : i32
    %c0_i32_1 = arith.constant 0 : i32
    return %c0_i32, %c0_i32_0 : i32, i32
  }
  func.func @transform_5(%arg0: i32) -> (i32, i32) {
    %c0_i32 = arith.constant 0 : i32
    %c0_i32_0 = arith.constant 0 : i32
    %c0_i32_1 = arith.constant 0 : i32
    return %c0_i32, %c0_i32_0 : i32, i32
  }
  func.func @transform_6(%arg0: i32) -> (i32, i32) {
    %c0_i32 = arith.constant 0 : i32
    %c0_i32_0 = arith.constant 0 : i32
    %c0_i32_1 = arith.constant 0 : i32
    return %c0_i32, %c0_i32_0 : i32, i32
  }
  func.func @transform_7(%arg0: i32) -> (i32, i32) {
    %c0_i32 = arith.constant 0 : i32
    %c0_i32_0 = arith.constant 0 : i32
    return %arg0, %c0_i32 : i32, i32
  }
}

</mosaic_0001>

<bundles_post_ra>
// kernel: tile.46
= control target key start
LH: loop header
LB: loop body
LE: loop exit
PB: predicated region body
PF: predicated region fallthrough
CT: control target
= control target key end

     0   :  { %s22_s0 = inlined_call_operand.vmem [shape: f32[32], index: 0, kind: input, shape index: {}]   ;;  %s23_s1 = inlined_call_operand.vmem [shape: f32[4,32], index: 1, kind: output, shape index: {}]  }
   0x1   :  { %v4_v0 = vld [vmem:[%s22_s0] ss:$0 sm:$0xff] }
   0x2   :  { %5 = vst [vmem:[%s23_s1] sm:$0xf] %v4_v0 }

// kernel: mul.39
= control target key start
LH: loop header
LB: loop body
LE: loop exit
PB: predicated region body
PF: predicated region fallthrough
CT: control target
= control target key end

     0   :  { %vm7_vm0 = vcmask 261120   ;;  %s37_s8 = smov 32   ;;  %s38_s9 = smov 64   ;;  %vm13_vm1 = vcmask 1048320   ;;  %vm19_vm2 = vcmask 785920   ;;  %vm25_vm3 = vcmask 523520   ;;  %s55_s0 = inlined_call_operand.vmem [shape: f32[4,32], index: 0, kind: input, shape index: {}]   ;;  %s56_s1 = inlined_call_operand.vmem [shape: f32[128], index: 1, kind: output, shape index: {}]  }
   0x1   :  { %v4_v0 = vld [vmem:[%s55_s0] sm:$0xf]  ;;  %s36_s0 = smov 96  }
   0x2   :  { %5 = vst [vmem:[#allocation1] sm:$0xf] %v4_v0 }
   0x9   :  { %v10_v1 = vld [vmem:[#allocation1 + $0x3] sm:$0x1]   ;;  %v22_v2 = vld [vmem:[#allocation1 + $0x1] sm:$0x1]   ;;  %v6_v3 = vld [vmem:[#allocation1] sm:$0x1]  }
   0xa   :  { %11 = vrot.lane.b32.xlu0 %v10_v1, %s36_s0  ;;  %23 = vrot.lane.b32.xlu1 %v22_v2, %s37_s8  ;;  %v16_v4 = vld [vmem:[#allocation1 + $0x2] sm:$0x1]   ;;  %8 = vst.msk [vmem:[#allocation0] sm:$0x1] %vm7_vm0, %v6_v3  }
   0xe   :  { %17 = vrot.lane.b32.xlu0 %v16_v4, %s38_s9 }
  0x7c   :  { %v12_v5 = vpop.permute.xlu0 %11   ;;  %v24_v6 = vpop.permute.xlu1 %23  }
  0x7d   :  { %14 = vst.msk [vmem:[#allocation0] sm:$0x1] %vm13_vm1, %v12_v5  }
  0x80   :  { %v18_v7 = vpop.permute.xlu0 %17  }
  0x81   :  { %20 = vst.msk [vmem:[#allocation0] sm:$0x1] %vm19_vm2, %v18_v7  }
  0x82   :  { %26 = vst.msk [vmem:[#allocation0] sm:$0x1] %vm25_vm3, %v24_v6  }
  0x89   :  { %v30_v8 = vld [vmem:[#allocation0] sm:$0x1] }
  0x8a   :  { %32 = vst [vmem:[%s56_s1] sm:$0x1] %v30_v8 }

// kernel: squeeze.3
= control target key start
LH: loop header
LB: loop body
LE: loop exit
PB: predicated region body
PF: predicated region fallthrough
CT: control target
= control target key end

     0   :  { %s35_s8 = smov 96   ;;  %vm3_vm0 = vcmask 261120   ;;  %s37_s15 = smov 64   ;;  %vm9_vm1 = vcmask 1048320   ;;  %vm15_vm2 = vcmask 785920   ;;  %vm21_vm3 = vcmask 523520   ;;  %s63_s0 = inlined_call_operand.vmem [shape: f32[16,32], index: 0, kind: input, shape index: {}]   ;;  %s64_s1 = inlined_call_operand.vmem [shape: f32[4,128], index: 1, kind: output, shape index: {}]  }
   0x1   :  { %v29_v0 = vld [vmem:[%s63_s0 + $0x3] ss:$4 sm:$0xf]   ;;  %v30_v1 = vld [vmem:[%s63_s0 + $0x2] ss:$4 sm:$0xf]  }
   0x2   :  { %7 = vrot.lane.b32.xlu0 %v29_v0, %s35_s8  ;;  %v31_v2 = vld [vmem:[%s63_s0 + $0x1] ss:$4 sm:$0xf]   ;;  %v2_v3 = vld [vmem:[%s63_s0] ss:$4 sm:$0xf]  }
   0x3   :  { %s36_s0 = smov 32   ;;  %4 = vst.msk [vmem:[#allocation0] sm:$0xf] %vm3_vm0, %v2_v3  }
   0x4   :  { %19 = vrot.lane.b32.xlu1 %v31_v2, %s36_s0 }
   0x6   :  { %13 = vrot.lane.b32.xlu0 %v30_v1, %s37_s15 }
  0x74   :  { %v8_v4 = vpop.permute.xlu0 %7  }
  0x75   :  { %10 = vst.msk [vmem:[#allocation0] sm:$0xf] %vm9_vm1, %v8_v4  }
  0x76   :  { %v20_v5 = vpop.permute.xlu1 %19  }
  0x78   :  { %v14_v6 = vpop.permute.xlu0 %13  }
  0x79   :  { %16 = vst.msk [vmem:[#allocation0] sm:$0xf] %vm15_vm2, %v14_v6  }
  0x7a   :  { %22 = vst.msk [vmem:[#allocation0] sm:$0xf] %vm21_vm3, %v20_v5  }
  0x81   :  { %v26_v7 = vld [vmem:[#allocation0] sm:$0xf] }
  0x82   :  { %28 = vst [vmem:[%s64_s1] sm:$0xf] %v26_v7 }

// kernel: _whvi_forward_impl.1
= control target key start
LH: loop header
LB: loop body
LE: loop exit
PB: predicated region body
PF: predicated region fallthrough
CT: control target
= control target key end

     0   :  { %s7137_s3 = inlined_call_operand.vmem [shape: f32[128,128], index: 3, kind: input, shape index: {}]   ;;  %s7138_s0 = inlined_call_operand.vmem [shape: f32[32,128], index: 0, kind: input, shape index: {}]   ;;  %s7139_s4 = inlined_call_operand.vmem [shape: f32[128,128], index: 4, kind: input, shape index: {}]   ;;  %s7140_s1 = inlined_call_operand.vmem [shape: f32[32,128], index: 1, kind: input, shape index: {}]   ;;  %s7141_s5 = inlined_call_operand.vmem [shape: f32[128,128], index: 5, kind: input, shape index: {}]   ;;  %s7142_s6 = inlined_call_operand.vmem [shape: f32[128,128], index: 6, kind: input, shape index: {}]   ;;  %s7143_s2 = inlined_call_operand.vmem [shape: f32[32,128], index: 2, kind: input, shape index: {}]   ;;  %s7144_s7 = inlined_call_operand.vmem [shape: f32[32,128], index: 7, kind: output, shape index: {}]  }
   0x1   :  { %v30_v0 = vld [vmem:[%s7137_s3] sm:$0xff]  ;;  %v31_v1 = vld [vmem:[%s7137_s3 + $0x8] sm:$0xff]  ;;  %v32_v2 = vld [vmem:[%s7137_s3 + $0x10] sm:$0xff] }
   0x2   :  { %v47_v3 = vand.u32 4294901760, %v30_v0  ;;  %v50_v4 = vand.u32 4294901760, %v31_v1  ;;  %v33_v5 = vld [vmem:[%s7137_s3 + $0x18] sm:$0xff]  ;;  %v53_v6 = vand.u32 4294901760, %v32_v2  ;;  %v34_v7 = vld [vmem:[%s7137_s3 + $0x20] sm:$0xff]  ;;  %v35_v8 = vld [vmem:[%s7137_s3 + $0x28] sm:$0xff] }
   0x3   :  { %v56_v9 = vand.u32 4294901760, %v33_v5  ;;  %v59_v11 = vand.u32 4294901760, %v34_v7  ;;  %v62_v12 = vand.u32 4294901760, %v35_v8  ;;  %v5507_v14 = vld [vmem:[%s7137_s3 + $0x30] sm:$0xff]  ;;  %v5512_v15 = vld [vmem:[%s7137_s3 + $0x38] sm:$0xff]  ;;  %v26_v16 = vld [vmem:[%s7138_s0] sm:$0xff] }
   0x4   :  { %v5500_v10 = vpack.c.bf16 %v50_v4, %v47_v3  ;;  %v5519_v17 = vand.u32 4294901760, %v26_v16  ;;  %v65_v19 = vand.u32 4294901760, %v5507_v14  ;;  %v68_v20 = vand.u32 4294901760, %v5512_v15  ;;  %v5529_v21 = vld [vmem:[%s7137_s3 + $0x40] sm:$0xff]  ;;  %v5534_v22 = vld [vmem:[%s7137_s3 + $0x48] sm:$0xff]  ;;  %v40_v31 = vld [vmem:[%s7137_s3 + $0x50] sm:$0xff] }
   0x5   :  { %v5502_v13 = vpack.c.bf16 %v56_v9, %v53_v6  ;;  %v5522_v18 = vpack.c.bf16 %v62_v12, %v59_v11  ;;  %v27_v24 = vld [vmem:[%s7138_s0 + $0x8] sm:$0xff]  ;;  %v5544_v26 = vsub.f32 %v30_v0, %v47_v3  ;;  %v5546_v27 = vsub.f32 %v31_v1, %v50_v4  ;;  %v41_v32 = vld [vmem:[%s7137_s3 + $0x58] sm:$0xff]  ;;  %v42_v37 = vld [vmem:[%s7137_s3 + $0x60] sm:$0xff] }
   0x6   :  { %4595 = vmatprep.subr.bf16.mxu0 %v5500_v10  ;;  %v5537_v23 = vsub.f32 %v26_v16, %v5519_v17  ;;  %v5553_v28 = vpack.c.bf16 %v68_v20, %v65_v19  ;;  %v71_v29 = vand.u32 4294901760, %v5529_v21  ;;  %v74_v30 = vand.u32 4294901760, %v5534_v22  ;;  %v43_v43 = vld [vmem:[%s7137_s3 + $0x68] sm:$0xff]  ;;  %v44_v44 = vld [vmem:[%s7137_s3 + $0x70] sm:$0xff]  ;;  %v45_v47 = vld [vmem:[%s7137_s3 + $0x78] sm:$0xff] }
   0x7   :  { %4597 = vmatpush3.bf16.msra.mxu0 %v5500_v10  ;;  %v5566_v34 = vand.u32 4294901760, %v27_v24  ;;  %v5568_v35 = vsub.f32 %v32_v2, %v53_v6  ;;  %v77_v36 = vand.u32 4294901760, %v40_v31  ;;  %v170_v39 = vand.u32 4294901760, %v5544_v26  ;;  %v28_v63 = vld [vmem:[%s7138_s0 + $0x10] sm:$0xff] }
   0x8   :  { %4599 = vmatprep.subr.bf16.mxu0 %v5502_v13  ;;  %v7147_v25 = vand.u32 4294901760, %v5537_v23  ;;  %v177_v40 = vand.u32 4294901760, %v5546_v27  ;;  %v5577_v41 = vpack.c.bf16 %v74_v30, %v71_v29  ;;  %v80_v42 = vand.u32 4294901760, %v41_v32 }
   0x9   :  { %v5585_v45 = vsub.f32 %v33_v5, %v56_v9  ;;  %v5587_v46 = vsub.f32 %v34_v7, %v59_v11  ;;  %v5593_v48 = vsub.f32 %v27_v24, %v5566_v34  ;;  %v184_v49 = vand.u32 4294901760, %v5568_v35  ;;  %v29_v7 = vld [vmem:[%s7138_s0 + $0x18] sm:$0xff] }
   0xa   :  { %v130_v33 = vsub.f32 %v5537_v23, %v7147_v25  ;;  %v5596_v50 = vsub.f32 %v35_v8, %v62_v12  ;;  %v83_v51 = vand.u32 4294901760, %v42_v37  ;;  %v86_v52 = vand.u32 4294901760, %v43_v43 }
   0xb   :  { %4601 = vmatpush3.bf16.msra.mxu0 %v5502_v13  ;;  %v89_v53 = vand.u32 4294901760, %v44_v44  ;;  %v171_v54 = vsub.f32 %v5544_v26, %v170_v39  ;;  %v178_v55 = vsub.f32 %v5546_v27, %v177_v40  ;;  %v5606_v56 = vpack.c.bf16 %v80_v42, %v77_v36 }
   0xc   :  { %4603 = vmatprep.subr.bf16.mxu0 %v5522_v18  ;;  %v131_v38 = vand.u32 4294901760, %v130_v33  ;;  %v92_v57 = vand.u32 4294901760, %v45_v47  ;;  %v191_v58 = vand.u32 4294901760, %v5585_v45  ;;  %v198_v59 = vand.u32 4294901760, %v5587_v46 }
   0xd   :  { %v7146_v60 = vand.u32 4294901760, %v5593_v48  ;;  %v5614_v61 = vsub.f32 %v5568_v35, %v184_v49  ;;  %v205_v62 = vand.u32 4294901760, %v5596_v50  ;;  %v5621_v0 = vpack.c.bf16 %v86_v52, %v83_v51 }
   0xe   :  { %3714 = vmatprep.mubr.f32.mxu0 %v131_v38  ;;  %v172_v1 = vand.u32 4294901760, %v171_v54  ;;  %v179_v2 = vand.u32 4294901760, %v178_v55  ;;  %v5624_v3 = vpack.c.bf16 %v92_v57, %v89_v53  ;;  %v192_v4 = vsub.f32 %v5585_v45, %v191_v58 }
   0xf   :  { %4605 = vmatpush3.bf16.msra.mxu0 %v5522_v18  ;;  %v199_v5 = vsub.f32 %v5587_v46, %v198_v59  ;;  %v5628_v6 = vand.u32 4294901760, %v28_v63  ;;  %v140_v8 = vsub.f32 %v5593_v48, %v7146_v60  ;;  %v186_v9 = vand.u32 4294901760, %v5614_v61 }
  0x10   :  { %4607 = vmatprep.subr.bf16.mxu0 %v5553_v28  ;;  %v206_v11 = vsub.f32 %v5596_v50, %v205_v62  ;;  %v5641_v12 = vsub.f32 %v5507_v14, %v65_v19  ;;  %v5646_v16 = vsub.f32 %v5512_v15, %v68_v20  ;;  %v5649_v24 = vsub.f32 %v5529_v21, %v71_v29 }
  0x11   :  { %v5652_v33 = vsub.f32 %v5534_v22, %v74_v30  ;;  %v5655_v38 = vsub.f32 %v28_v63, %v5628_v6  ;;  %v4626_v54 = vpack.c.bf16 %v179_v2, %v172_v1  ;;  %v5658_v55 = vsub.f32 %v40_v31, %v77_v36 }
  0x12   :  { %v5660_v14 = vsub.f32 %v41_v32, %v80_v42  ;;  %v5662_v19 = vand.u32 4294901760, %v29_v7  ;;  %v5665_v15 = vsub.f32 %v42_v37, %v83_v51  ;;  %v5667_v20 = vsub.f32 %v43_v43, %v86_v52 }
  0x13   :  { %4609 = vmatpush3.bf16.msra.mxu0 %v5553_v28  ;;  %v7145_v21 = vand.u32 4294901760, %v5655_v38  ;;  %v5670_v22 = vsub.f32 %v44_v44, %v89_v53  ;;  %v141_v29 = vand.u32 4294901760, %v140_v8  ;;  %v193_v30 = vand.u32 4294901760, %v192_v4 }
  0x14   :  { %4611 = vmatprep.subr.bf16.mxu0 %v5577_v41  ;;  %v5672_v61 = vsub.f32 %v45_v47, %v92_v57  ;;  %v5675_v31 = vsub.f32 %v29_v7, %v5662_v19  ;;  %v212_v32 = vand.u32 4294901760, %v5641_v12  ;;  %v219_v36 = vand.u32 4294901760, %v5646_v16 }
  0x15   :  { %v226_v37 = vand.u32 4294901760, %v5649_v24  ;;  %v233_v42 = vand.u32 4294901760, %v5652_v33  ;;  %v240_v43 = vand.u32 4294901760, %v5658_v55  ;;  %v247_v44 = vand.u32 4294901760, %v5660_v14 }
  0x16   :  { %v150_v47 = vsub.f32 %v5655_v38, %v7145_v21  ;;  %v7149_v51 = vand.u32 4294901760, %v5675_v31  ;;  %v254_v52 = vand.u32 4294901760, %v5665_v15  ;;  %v261_v53 = vand.u32 4294901760, %v5667_v20 }
  0x17   :  { %4613 = vmatpush3.bf16.msra.mxu0 %v5577_v41  ;;  %v268_v57 = vand.u32 4294901760, %v5670_v22  ;;  %v5696_v63 = vpack.c.bf16 %v177_v40, %v170_v39  ;;  %v275_v1 = vand.u32 4294901760, %v5672_v61  ;;  %v5701_v2 = vpack.c.bf16 %v191_v58, %v184_v49 }
  0x18   :  { %4615 = vmatprep.subr.bf16.mxu0 %v5606_v56  ;;  %v5703_v4 = vpack.c.bf16 %v205_v62, %v198_v59  ;;  %v5705_v7 = vpack.c.bf16 %v219_v36, %v212_v32  ;;  %v160_v8 = vsub.f32 %v5675_v31, %v7149_v51  ;;  %v5710_v21 = vpack.c.bf16 %v233_v42, %v226_v37 }
  0x19   :  { %v5712_v60 = vpack.c.bf16 %v247_v44, %v240_v43  ;;  %v5714_v39 = vpack.c.bf16 %v261_v53, %v254_v52  ;;  %v200_v40 = vand.u32 4294901760, %v199_v5  ;;  %v207_v25 = vand.u32 4294901760, %v206_v11 }
  0x1a   :  { %7198 = vst [vmem:[#allocation2_spill] sm:$0xff] %v5705_v7  ;;  %7199 = vst [vmem:[#allocation3_spill] sm:$0xff] %v5710_v21  ;;  %v151_v49 = vand.u32 4294901760, %v150_v47  ;;  %v5717_v58 = vpack.c.bf16 %v275_v1, %v268_v57  ;;  %v4630_v59 = vpack.c.bf16 %v193_v30, %v186_v9  ;;  %v213_v62 = vsub.f32 %v5641_v12, %v212_v32 }
  0x1b   :  { %4617 = vmatpush3.bf16.msra.mxu0 %v5606_v56  ;;  %7200 = vst [vmem:[#allocation4_spill] sm:$0xff] %v5712_v60  ;;  %7201 = vst [vmem:[#allocation5_spill] sm:$0xff] %v5714_v39  ;;  %v220_v7 = vsub.f32 %v5646_v16, %v219_v36  ;;  %v161_v51 = vand.u32 4294901760, %v160_v8  ;;  %v4634_v21 = vpack.c.bf16 %v207_v25, %v200_v40  ;;  %v5762_v40 = vld [vmem:[%s7139_s4 + $0x18] sm:$0xff] }
  0x1c   :  { %4619 = vmatprep.subr.bf16.mxu0 %v5621_v0  ;;  %v214_v39 = vand.u32 4294901760, %v213_v62  ;;  %v227_v5 = vsub.f32 %v5649_v24, %v226_v37  ;;  %v234_v11 = vsub.f32 %v5652_v33, %v233_v42  ;;  %v241_v9 = vsub.f32 %v5658_v55, %v240_v43 }
  0x1d   :  { %v221_v60 = vand.u32 4294901760, %v220_v7  ;;  %v248_v25 = vsub.f32 %v5660_v14, %v247_v44  ;;  %v262_v42 = vsub.f32 %v5667_v20, %v261_v53  ;;  %v276_v8 = vsub.f32 %v5672_v61, %v275_v1 }
  0x1e   :  { %v235_v32 = vand.u32 4294901760, %v234_v11  ;;  %v242_v37 = vand.u32 4294901760, %v241_v9  ;;  %v4658_v53 = vpack.c.bf16 %v5546_v27, %v5544_v26  ;;  %v4666_v1 = vpack.c.bf16 %v5596_v50, %v5587_v46  ;;  %v5743_v26 = vld [vmem:[%s7139_s4] sm:$0xff]  ;;  %v5748_v27 = vld [vmem:[%s7139_s4 + $0x8] sm:$0xff] }
  0x1f   :  { %4621 = vmatpush3.bf16.msra.mxu0 %v5621_v0  ;;  %v4638_v30 = vpack.c.bf16 %v221_v60, %v214_v39  ;;  %v249_v47 = vand.u32 4294901760, %v248_v25  ;;  %v263_v7 = vand.u32 4294901760, %v262_v42  ;;  %v269_v60 = vsub.f32 %v5670_v22, %v268_v57 }
  0x20   :  { %4623 = vmatprep.subr.bf16.mxu0 %v5624_v3  ;;  %v4662_v57 = vpack.c.bf16 %v5585_v45, %v5568_v35  ;;  %v5753_v35 = vld [vmem:[%s7139_s4 + $0x10] sm:$0xff]  ;;  %v4670_v45 = vpack.c.bf16 %v5646_v16, %v5641_v12  ;;  %v841_v46 = vand.u32 4294901760, %v5743_v26  ;;  %v844_v50 = vand.u32 4294901760, %v5748_v27  ;;  %v5773_v12 = vld [vmem:[%s7139_s4 + $0x28] sm:$0xff] }
  0x21   :  { %v4646_v43 = vpack.c.bf16 %v249_v47, %v242_v37  ;;  %v270_v44 = vand.u32 4294901760, %v269_v60  ;;  %v850_v16 = vand.u32 4294901760, %v5762_v40  ;;  %v856_v11 = vand.u32 4294901760, %v5773_v12 }
  0x22   :  { %v5780_v62 = vpack.c.bf16 %v844_v50, %v841_v46  ;;  %v4678_v37 = vpack.c.bf16 %v5660_v14, %v5658_v55  ;;  %v4686_v14 = vpack.c.bf16 %v5672_v61, %v5670_v22  ;;  %v7205_v22 = vand.u32 4294901760, %v5675_v31  ;;  %v7207_v61 = vld [vmem:[#allocation3_spill] sm:$0xff] }
  0x23   :  { %4625 = vmatpush3.bf16.msra.mxu0 %v5624_v3 }
  0x24   :  { %4627 = vmatprep.subr.bf16.mxu0 %v4626_v54  ;;  %4787 = vmatprep.subr.bf16.mxu1 %v5780_v62 }
  0x25   :  { %4789 = vmatpush3.bf16.msra.mxu1 %v5780_v62 }
  0x26   :  { %3715 = vmatmul.mubr.f32.vlgmr.msra.gmra.mrb[0].mxu0 %v141_v29  ;;  %v228_v29 = vand.u32 4294901760, %v227_v5 }
  0x27   :  { %4629 = vmatpush3.bf16.msra.mxu0 %v4626_v54  ;;  %3717 = vmatprep.mubr.f32.mxu0 %v151_v49  ;;  %v255_v54 = vsub.f32 %v5665_v15, %v254_v52  ;;  %v277_v52 = vand.u32 4294901760, %v276_v8  ;;  %v847_v49 = vand.u32 4294901760, %v5753_v35 }
  0x28   :  { %4631 = vmatprep.subr.bf16.mxu0 %v4630_v59  ;;  %v4642_v36 = vpack.c.bf16 %v235_v32, %v228_v29  ;;  %v5798_v29 = vld [vmem:[%s7139_s4 + $0x38] sm:$0xff]  ;;  %v4674_v32 = vpack.c.bf16 %v5652_v33, %v5649_v24  ;;  %v5816_v24 = vld [vmem:[%s7139_s4 + $0x40] sm:$0xff]  ;;  %v5821_v33 = vld [vmem:[%s7139_s4 + $0x48] sm:$0xff] }
  0x29   :  { %v4654_v39 = vpack.c.bf16 %v277_v52, %v270_v44  ;;  %v5788_v9 = vpack.c.bf16 %v850_v16, %v847_v49  ;;  %v865_v42 = vand.u32 4294901760, %v5816_v24 }
  0x2a   :  { %3718 = vmatmul.mubr.f32.gmra.mrb[2].mxu0 %v161_v51  ;;  %v256_v51 = vand.u32 4294901760, %v255_v54 }
  0x2b   :  { %4633 = vmatpush3.bf16.msra.mxu0 %v4630_v59  ;;  %3752 = vmatprep.mubr.f32.mxu0 %v5519_v17  ;;  %v5768_v59 = vld [vmem:[%s7139_s4 + $0x20] sm:$0xff] }
  0x2c   :  { %4635 = vmatprep.subr.bf16.mxu0 %v4634_v21  ;;  %v853_v5 = vand.u32 4294901760, %v5768_v59  ;;  %4791 = vmatprep.subr.bf16.mxu1 %v5788_v9 }
  0x2d   :  { %4793 = vmatpush3.bf16.msra.mxu1 %v5788_v9 }
  0x2e   :  { %v5809_v25 = vpack.c.bf16 %v856_v11, %v853_v5 }
  0x2f   :  { %4637 = vmatpush3.bf16.msra.mxu0 %v4634_v21  ;;  %v4650_v21 = vpack.c.bf16 %v263_v7, %v256_v51  ;;  %v868_v51 = vand.u32 4294901760, %v5821_v33 }
  0x30   :  { %4639 = vmatprep.subr.bf16.mxu0 %v4638_v30  ;;  %4795 = vmatprep.subr.bf16.mxu1 %v5809_v25 }
  0x31   :  { %4797 = vmatpush3.bf16.msra.mxu1 %v5809_v25  ;;  %v5843_v55 = vpack.c.bf16 %v868_v51, %v865_v42 }
  0x33   :  { %4641 = vmatpush3.bf16.msra.mxu0 %v4638_v30  ;;  %v5793_v30 = vld [vmem:[%s7139_s4 + $0x30] sm:$0xff] }
  0x34   :  { %4643 = vmatprep.subr.bf16.mxu0 %v4642_v36  ;;  %v859_v54 = vand.u32 4294901760, %v5793_v30 }
  0x37   :  { %4645 = vmatpush3.bf16.msra.mxu0 %v4642_v36  ;;  %v862_v36 = vand.u32 4294901760, %v5798_v29 }
  0x38   :  { %4647 = vmatprep.subr.bf16.mxu0 %v4646_v43 }
  0x39   :  { %v5831_v47 = vpack.c.bf16 %v862_v36, %v859_v54 }
  0x3b   :  { %4649 = vmatpush3.bf16.msra.mxu0 %v4646_v43  ;;  %v4682_v43 = vpack.c.bf16 %v5667_v20, %v5665_v15  ;;  %4799 = vmatprep.subr.bf16.mxu1 %v5831_v47  ;;  %v7202_v15 = vand.u32 4294901760, %v5537_v23  ;;  %v7204_v20 = vand.u32 4294901760, %v5655_v38 }
  0x3c   :  { %4651 = vmatprep.subr.bf16.mxu0 %v4650_v21  ;;  %4801 = vmatpush3.bf16.msra.mxu1 %v5831_v47 }
  0x3d   :  { %4803 = vmatprep.subr.bf16.mxu1 %v5843_v55 }
  0x3f   :  { %4653 = vmatpush3.bf16.msra.mxu0 %v4650_v21 }
  0x40   :  { %4655 = vmatprep.subr.bf16.mxu0 %v4654_v39  ;;  %4805 = vmatpush3.bf16.msra.mxu1 %v5843_v55 }
  0x43   :  { %4657 = vmatpush3.bf16.msra.mxu0 %v4654_v39 }
  0x44   :  { %4659 = vmatprep.subr.bf16.mxu0 %v4658_v53 }
  0x46   :  { %3753 = vmatmul.mubr.f32.vlgmr.msra.gmra.mrb[0].mxu0 %v5566_v34 }
  0x47   :  { %4661 = vmatpush3.bf16.msra.mxu0 %v4658_v53  ;;  %3755 = vmatprep.mubr.f32.mxu0 %v5628_v6 }
  0x48   :  { %4663 = vmatprep.subr.bf16.mxu0 %v4662_v57 }
  0x4a   :  { %3756 = vmatmul.mubr.f32.gmra.mrb[2].mxu0 %v5662_v19 }
  0x4b   :  { %4665 = vmatpush3.bf16.msra.mxu0 %v4662_v57  ;;  %3790 = vmatprep.mubr.f32.mxu0 %v5537_v23  ;;  %v7203_v23 = vand.u32 4294901760, %v5593_v48 }
  0x4c   :  { %4667 = vmatprep.subr.bf16.mxu0 %v4666_v1 }
  0x4f   :  { %4669 = vmatpush3.bf16.msra.mxu0 %v4666_v1 }
  0x50   :  { %4671 = vmatprep.subr.bf16.mxu0 %v4670_v45 }
  0x53   :  { %4673 = vmatpush3.bf16.msra.mxu0 %v4670_v45 }
  0x54   :  { %4675 = vmatprep.subr.bf16.mxu0 %v4674_v32 }
  0x57   :  { %4677 = vmatpush3.bf16.msra.mxu0 %v4674_v32 }
  0x58   :  { %4679 = vmatprep.subr.bf16.mxu0 %v4678_v37 }
  0x5b   :  { %4681 = vmatpush3.bf16.msra.mxu0 %v4678_v37 }
  0x5c   :  { %4683 = vmatprep.subr.bf16.mxu0 %v4682_v43 }
  0x5f   :  { %4685 = vmatpush3.bf16.msra.mxu0 %v4682_v43 }
  0x60   :  { %4687 = vmatprep.subr.bf16.mxu0 %v4686_v14 }
  0x63   :  { %4689 = vmatpush3.bf16.msra.mxu0 %v4686_v14 }
  0x64   :  { %4691 = vmatprep.subr.bf16.mxu0 %v5500_v10 }
  0x66   :  { %3791 = vmatmul.mubr.f32.vlgmr.msra.gmra.mrb[0].mxu0 %v5593_v48  ;;  %v7206_v48 = vld [vmem:[#allocation2_spill] sm:$0xff] }
  0x67   :  { %4693 = vmatpush3.bf16.msra.mxu0 %v5500_v10  ;;  %3793 = vmatprep.mubr.f32.mxu0 %v5655_v38  ;;  %v7208_v38 = vld [vmem:[#allocation4_spill] sm:$0xff] }
  0x68   :  { %4695 = vmatprep.subr.bf16.mxu0 %v5502_v13 }
  0x6a   :  { %3794 = vmatmul.mubr.f32.gmra.mrb[2].mxu0 %v5675_v31  ;;  %v7209_v31 = vld [vmem:[#allocation5_spill] sm:$0xff] }
  0x6b   :  { %4697 = vmatpush3.bf16.msra.mxu0 %v5502_v13  ;;  %3828 = vmatprep.mubr.f32.mxu0 %v7202_v15 }
  0x6c   :  { %4699 = vmatprep.subr.bf16.mxu0 %v5522_v18 }
  0x6f   :  { %4701 = vmatpush3.bf16.msra.mxu0 %v5522_v18 }
  0x70   :  { %4703 = vmatprep.subr.bf16.mxu0 %v5553_v28 }
  0x73   :  { %4705 = vmatpush3.bf16.msra.mxu0 %v5553_v28 }
  0x74   :  { %4707 = vmatprep.subr.bf16.mxu0 %v5577_v41 }
  0x77   :  { %4709 = vmatpush3.bf16.msra.mxu0 %v5577_v41 }
  0x78   :  { %4711 = vmatprep.subr.bf16.mxu0 %v5606_v56 }
  0x7b   :  { %4713 = vmatpush3.bf16.msra.mxu0 %v5606_v56 }
  0x7c   :  { %4715 = vmatprep.subr.bf16.mxu0 %v5621_v0 }
  0x7f   :  { %4717 = vmatpush3.bf16.msra.mxu0 %v5621_v0 }
  0x80   :  { %4719 = vmatprep.subr.bf16.mxu0 %v5624_v3 }
  0x83   :  { %4721 = vmatpush3.bf16.msra.mxu0 %v5624_v3 }
  0x84   :  { %4723 = vmatprep.subr.bf16.mxu0 %v5696_v63 }
  0x86   :  { %3829 = vmatmul.mubr.f32.vlgmr.msra.gmra.mrb[0].mxu0 %v7203_v23 }
  0x87   :  { %4725 = vmatpush3.bf16.msra.mxu0 %v5696_v63  ;;  %3831 = vmatprep.mubr.f32.mxu0 %v7204_v20  ;;  %v838_v63 = vld [vmem:[%s7139_s4 + $0x70] sm:$0xff] }
  0x88   :  { %4727 = vmatprep.subr.bf16.mxu0 %v5701_v2 }
  0x8a   :  { %3832 = vmatmul.mubr.f32.gmra.mrb[2].mxu0 %v7205_v22 }
  0x8b   :  { %4729 = vmatpush3.bf16.msra.mxu0 %v5701_v2  ;;  %3866 = vmatprep.mubr.f32.mxu0 %v5519_v17  ;;  %v839_v2 = vld [vmem:[%s7139_s4 + $0x78] sm:$0xff] }
  0x8c   :  { %4731 = vmatprep.subr.bf16.mxu0 %v5703_v4 }
  0x8f   :  { %4733 = vmatpush3.bf16.msra.mxu0 %v5703_v4  ;;  %v883_v4 = vand.u32 4294901760, %v838_v63 }
  0x90   :  { %4735 = vmatprep.subr.bf16.mxu0 %v7206_v48 }
  0x91   :  { %v5991_v22 = vsub.f32 %v838_v63, %v883_v4 }
  0x93   :  { %4737 = vmatpush3.bf16.msra.mxu0 %v7206_v48 }
  0x94   :  { %4739 = vmatprep.subr.bf16.mxu0 %v7207_v61 }
  0x97   :  { %4741 = vmatpush3.bf16.msra.mxu0 %v7207_v61 }
  0x98   :  { %4743 = vmatprep.subr.bf16.mxu0 %v7208_v38 }
  0x9b   :  { %4745 = vmatpush3.bf16.msra.mxu0 %v7208_v38 }
  0x9c   :  { %4747 = vmatprep.subr.bf16.mxu0 %v7209_v31 }
  0x9f   :  { %4749 = vmatpush3.bf16.msra.mxu0 %v7209_v31  ;;  %v7154_v31 = vand.u32 4294901760, %v5991_v22 }
  0xa0   :  { %4751 = vmatprep.subr.bf16.mxu0 %v5717_v58 }
  0xa3   :  { %4753 = vmatpush3.bf16.msra.mxu0 %v5717_v58  ;;  %v886_v58 = vand.u32 4294901760, %v839_v2 }
  0xa4   :  { %4755 = vmatprep.subr.bf16.mxu0 %v5500_v10 }
  0xa5   :  { %v5955_v8 = vpack.c.bf16 %v886_v58, %v883_v4  ;;  %v5993_v48 = vsub.f32 %v839_v2, %v886_v58 }
  0xa6   :  { %3867 = vmatmul.mubr.f32.vlgmr.msra.gmra.mrb[0].mxu0 %v5566_v34 }
  0xa7   :  { %4757 = vmatpush3.bf16.msra.mxu0 %v5500_v10  ;;  %3869 = vmatprep.mubr.f32.mxu0 %v5628_v6  ;;  %v834_v10 = vld [vmem:[%s7139_s4 + $0x50] sm:$0xff]  ;;  %v6024_v58 = vpack.c.bf16 %v5993_v48, %v5991_v22 }
  0xa8   :  { %4759 = vmatprep.subr.bf16.mxu0 %v5502_v13 }
  0xaa   :  { %3870 = vmatmul.mubr.f32.gmra.mrb[2].mxu0 %v5662_v19 }
  0xab   :  { %4761 = vmatpush3.bf16.msra.mxu0 %v5502_v13  ;;  %3904 = vmatprep.mubr.f32.mxu0 %v5519_v17  ;;  %v835_v13 = vld [vmem:[%s7139_s4 + $0x58] sm:$0xff]  ;;  %v871_v17 = vand.u32 4294901760, %v834_v10 }
  0xac   :  { %4763 = vmatprep.subr.bf16.mxu0 %v5522_v18 }
  0xad   :  { %v5968_v57 = vsub.f32 %v834_v10, %v871_v17  ;;  %v7153_v10 = vand.u32 4294901760, %v5993_v48 }
  0xaf   :  { %4765 = vmatpush3.bf16.msra.mxu0 %v5522_v18  ;;  %v874_v18 = vand.u32 4294901760, %v835_v13 }
  0xb0   :  { %4767 = vmatprep.subr.bf16.mxu0 %v5553_v28 }
  0xb1   :  { %v5970_v1 = vsub.f32 %v835_v13, %v874_v18 }
  0xb3   :  { %4769 = vmatpush3.bf16.msra.mxu0 %v5553_v28  ;;  %v5923_v28 = vpack.c.bf16 %v874_v18, %v871_v17  ;;  %v1063_v17 = vsub.f32 %v5991_v22, %v7154_v31  ;;  %v1070_v18 = vsub.f32 %v5993_v48, %v7153_v10  ;;  %v6016_v2 = vpack.c.bf16 %v5970_v1, %v5968_v57 }
  0xb4   :  { %4771 = vmatprep.subr.bf16.mxu0 %v5577_v41 }
  0xb5   :  { %4807 = vmatprep.subr.bf16.mxu1 %v5923_v28 }
  0xb6   :  { %4809 = vmatpush3.bf16.msra.mxu1 %v5923_v28 }
  0xb7   :  { %4773 = vmatpush3.bf16.msra.mxu0 %v5577_v41  ;;  %v837_v41 = vld [vmem:[%s7139_s4 + $0x68] sm:$0xff] }
  0xb8   :  { %4775 = vmatprep.subr.bf16.mxu0 %v5606_v56 }
  0xbb   :  { %4777 = vmatpush3.bf16.msra.mxu0 %v5606_v56 }
  0xbc   :  { %4779 = vmatprep.subr.bf16.mxu0 %v5621_v0 }
  0xbf   :  { %4781 = vmatpush3.bf16.msra.mxu0 %v5621_v0  ;;  %v880_v0 = vand.u32 4294901760, %v837_v41 }
  0xc0   :  { %4783 = vmatprep.subr.bf16.mxu0 %v5624_v3 }
  0xc1   :  { %v5982_v32 = vsub.f32 %v837_v41, %v880_v0  ;;  %v1064_v41 = vand.u32 4294901760, %v1063_v17 }
  0xc3   :  { %4785 = vmatpush3.bf16.msra.mxu0 %v5624_v3  ;;  %v7155_v15 = vand.u32 4294901760, %v5982_v32 }
  0xc5   :  { %v1056_v61 = vsub.f32 %v5982_v32, %v7155_v15 }
  0xc6   :  { %3905 = vmatmul.mubr.f32.vlgmr.msra.gmra.mrb[0].mxu0 %v5566_v34  ;;  %v836_v34 = vld [vmem:[%s7139_s4 + $0x60] sm:$0xff] }
  0xc7   :  { %3907 = vmatprep.mubr.f32.mxu0 %v5628_v6  ;;  %v877_v56 = vand.u32 4294901760, %v836_v34  ;;  %v5938_v6 = vsub.f32 %v5743_v26, %v841_v46  ;;  %v7158_v26 = vand.u32 4294901760, %v5968_v57  ;;  %v1057_v13 = vand.u32 4294901760, %v1056_v61 }
  0xc9   :  { %v5933_v3 = vpack.c.bf16 %v880_v0, %v877_v56  ;;  %v964_v7 = vand.u32 4294901760, %v5938_v6  ;;  %v1035_v45 = vsub.f32 %v5968_v57, %v7158_v26 }
  0xca   :  { %3908 = vmatmul.mubr.f32.gmra.mrb[2].mxu0 %v5662_v19  ;;  %v5943_v19 = vsub.f32 %v5748_v27, %v844_v50  ;;  %v7157_v27 = vand.u32 4294901760, %v5970_v1  ;;  %v5980_v50 = vsub.f32 %v836_v34, %v877_v56  ;;  %v1071_v56 = vand.u32 4294901760, %v1070_v18 }
  0xcb   :  { %4811 = vmatprep.subr.bf16.mxu1 %v5933_v3  ;;  %v965_v21 = vsub.f32 %v5938_v6, %v964_v7  ;;  %v1036_v37 = vand.u32 4294901760, %v1035_v45  ;;  %v6075_v18 = vsub.f32 %v5793_v30, %v859_v54 }
  0xcc   :  { %v971_v60 = vand.u32 4294901760, %v5943_v19  ;;  %4813 = vmatpush3.bf16.msra.mxu1 %v5933_v3  ;;  %v1042_v46 = vsub.f32 %v5970_v1, %v7157_v27  ;;  %v7156_v14 = vand.u32 4294901760, %v5980_v50  ;;  %v6008_v0 = vpack.c.bf16 %v1071_v56, %v1064_v41 }
  0xcd   :  { %4815 = vmatprep.subr.bf16.mxu1 %v5955_v8  ;;  %v966_v52 = vand.u32 4294901760, %v965_v21  ;;  %v6012_v63 = vpack.c.bf16 %v5943_v19, %v5938_v6  ;;  %v6020_v4 = vpack.c.bf16 %v5982_v32, %v5980_v50  ;;  %v6029_v21 = vsub.f32 %v5753_v35, %v847_v49 }
  0xce   :  { %v972_v44 = vsub.f32 %v5943_v19, %v971_v60  ;;  %v1043_v43 = vand.u32 4294901760, %v1042_v46  ;;  %v1049_v20 = vsub.f32 %v5980_v50, %v7156_v14  ;;  %v816_v46 = vld [vmem:[%s7140_s1] sm:$0xff]  ;;  %v6047_v35 = vsub.f32 %v5768_v59, %v853_v5 }
  0xcf   :  { %v6080_v41 = vsub.f32 %v5798_v29, %v862_v36 }
  0xd0   :  { %v973_v39 = vand.u32 4294901760, %v972_v44  ;;  %4817 = vmatpush3.bf16.msra.mxu1 %v5955_v8  ;;  %v5986_v23 = vpack.c.bf16 %v1043_v43, %v1036_v37  ;;  %v1050_v38 = vand.u32 4294901760, %v1049_v20  ;;  %v6034_v44 = vsub.f32 %v5762_v40, %v850_v16  ;;  %v819_v20 = vld [vmem:[%s7140_s1 + $0x18] sm:$0xff] }
  0xd1   :  { %v6052_v40 = vsub.f32 %v5773_v12, %v856_v11  ;;  %v818_v12 = vld [vmem:[%s7140_s1 + $0x10] sm:$0xff]  ;;  %v7160_v11 = vand.u32 4294901760, %v6047_v35  ;;  %v7210_v6 = vand.u32 4294901760, %v6047_v35 }
  0xd2   :  { %v5965_v53 = vpack.c.bf16 %v973_v39, %v966_v52  ;;  %v6006_v34 = vpack.c.bf16 %v1057_v13, %v1050_v38  ;;  %v817_v52 = vld [vmem:[%s7140_s1 + $0x8] sm:$0xff]  ;;  %v978_v39 = vand.u32 4294901760, %v6029_v21  ;;  %v985_v45 = vand.u32 4294901760, %v6034_v44 }
  0xd3   :  { %v7159_v38 = vand.u32 4294901760, %v6052_v40  ;;  %v993_v29 = vsub.f32 %v6047_v35, %v7160_v11  ;;  %v7211_v19 = vand.u32 4294901760, %v6052_v40 }
  0xd4   :  { %4819 = vmatprep.subr.bf16.mxu1 %v5965_v53  ;;  %v979_v61 = vsub.f32 %v6029_v21, %v978_v39  ;;  %v986_v59 = vsub.f32 %v6034_v44, %v985_v45 }
  0xd5   :  { %v1000_v54 = vsub.f32 %v6052_v40, %v7159_v38  ;;  %v994_v26 = vand.u32 4294901760, %v993_v29 }
  0xd6   :  { %v980_v10 = vand.u32 4294901760, %v979_v61  ;;  %v987_v31 = vand.u32 4294901760, %v986_v59 }
  0xd7   :  { %v1001_v38 = vand.u32 4294901760, %v1000_v54 }
  0xd8   :  { %v4822_v14 = vpack.c.bf16 %v987_v31, %v980_v10 }
 0x199   :  { %v3906_v49 = vpop.f32.mrb[0].mxu0 }
 0x19a   :  { %v821_v16 = vmul.f32 %v3906_v49, %v817_v52  ;;  %v794_v37 = vpop.f32.mrb[1].mxu0 }
 0x19b   :  { %v820_v43 = vmul.f32 %v816_v46, %v794_v37 }
 0x19c   :  { %v6063_v5 = vand.u32 4294901760, %v821_v16 }
 0x19d   :  { %v6070_v13 = vand.u32 4294901760, %v820_v43  ;;  %v3909_v17 = vpop.f32.mrb[2].mxu0 }
 0x19e   :  { %v6083_v56 = vsub.f32 %v821_v16, %v6063_v5  ;;  %v823_v52 = vmul.f32 %v3909_v17, %v819_v20  ;;  %v806_v46 = vpop.f32.mrb[3].mxu0  ;;  %v7161_v20 = vand.u32 4294901760, %v6080_v41  ;;  %v6116_v17 = vsub.f32 %v5821_v33, %v868_v51 }
 0x19f   :  { %v6086_v49 = vsub.f32 %v820_v43, %v6070_v13  ;;  %v822_v37 = vmul.f32 %v818_v12, %v806_v46  ;;  %v7162_v43 = vand.u32 4294901760, %v6075_v18  ;;  %v6111_v12 = vsub.f32 %v5816_v24, %v865_v42 }
 0x1a0   :  { %v6088_v15 = vand.u32 4294901760, %v823_v52  ;;  %v933_v30 = vand.u32 4294901760, %v6083_v56  ;;  %v1014_v42 = vsub.f32 %v6080_v41, %v7161_v20 }
 0x1a1   :  { %v6097_v36 = vand.u32 4294901760, %v822_v37  ;;  %v923_v16 = vand.u32 4294901760, %v6086_v49  ;;  %v1007_v33 = vsub.f32 %v6075_v18, %v7162_v43  ;;  %v1020_v10 = vand.u32 4294901760, %v6111_v12 }
 0x1a2   :  { %v6103_v61 = vsub.f32 %v823_v52, %v6088_v15  ;;  %v934_v59 = vsub.f32 %v6083_v56, %v933_v30  ;;  %v1015_v43 = vand.u32 4294901760, %v1014_v42  ;;  %v6186_v42 = vld [vmem:[%s7141_s5 + $0x18] sm:$0xff] }
 0x1a3   :  { %v6119_v46 = vsub.f32 %v822_v37, %v6097_v36  ;;  %v924_v52 = vsub.f32 %v6086_v49, %v923_v16  ;;  %v1027_v37 = vand.u32 4294901760, %v6116_v17  ;;  %v1008_v20 = vand.u32 4294901760, %v1007_v33 }
 0x1a4   :  { %v7163_v27 = vand.u32 4294901760, %v6103_v61  ;;  %v935_v51 = vand.u32 4294901760, %v934_v59 }
 0x1a5   :  { %v925_v11 = vand.u32 4294901760, %v924_v52  ;;  %v943_v24 = vand.u32 4294901760, %v6119_v46  ;;  %v4826_v52 = vpack.c.bf16 %v1001_v38, %v994_v26 }
 0x1a6   :  { %v954_v31 = vsub.f32 %v6103_v61, %v7163_v27  ;;  %v1021_v27 = vsub.f32 %v6111_v12, %v1020_v10 }
 0x1a7   :  { %3942 = vmatprep.mubr.f32.mxu1 %v925_v11  ;;  %v944_v29 = vsub.f32 %v6119_v46, %v943_v24  ;;  %v1028_v11 = vsub.f32 %v6116_v17, %v1027_v37 }
 0x1a8   :  { %3943 = vmatmul.mubr.f32.vlgmr.msra.gmra.mrb[0].mxu1 %v935_v51  ;;  %v955_v59 = vand.u32 4294901760, %v954_v31  ;;  %v1022_v26 = vand.u32 4294901760, %v1021_v27  ;;  %v4854_v27 = vpack.c.bf16 %v6034_v44, %v6029_v21  ;;  %v6192_v31 = vld [vmem:[%s7141_s5 + $0x20] sm:$0xff]  ;;  %v7214_v21 = vand.u32 4294901760, %v6080_v41 }
 0x1a9   :  { %4821 = vmatpush3.bf16.msra.mxu1 %v5965_v53  ;;  %v945_v54 = vand.u32 4294901760, %v944_v29  ;;  %v4830_v53 = vpack.c.bf16 %v1015_v43, %v1008_v20  ;;  %v1029_v38 = vand.u32 4294901760, %v1028_v11  ;;  %v6197_v29 = vld [vmem:[%s7141_s5 + $0x28] sm:$0xff] }
 0x1aa   :  { %4823 = vmatprep.subr.bf16.mxu1 %v4822_v14  ;;  %v7167_v11 = vand.u32 4294901760, %v6197_v29 }
 0x1ab   :  { %3945 = vmatprep.mubr.f32.mxu1 %v945_v54  ;;  %v4834_v33 = vpack.c.bf16 %v1029_v38, %v1022_v26  ;;  %v7164_v54 = vand.u32 4294901760, %v6186_v42  ;;  %v6217_v26 = vld [vmem:[%s7141_s5 + $0x30] sm:$0xff]  ;;  %v6222_v38 = vld [vmem:[%s7141_s5 + $0x38] sm:$0xff] }
 0x1ac   :  { %3946 = vmatmul.mubr.f32.gmra.mrb[2].mxu1 %v955_v59  ;;  %v7168_v59 = vand.u32 4294901760, %v6192_v31 }
 0x1ad   :  { %4825 = vmatpush3.bf16.msra.mxu1 %v4822_v14  ;;  %3980 = vmatprep.mubr.f32.mxu1 %v6070_v13  ;;  %v4858_v14 = vpack.c.bf16 %v6052_v40, %v6047_v35  ;;  %v7216_v35 = vand.u32 4294901760, %v5970_v1 }
 0x1ae   :  { %4827 = vmatprep.subr.bf16.mxu1 %v4826_v52 }
 0x1b1   :  { %4829 = vmatpush3.bf16.msra.mxu1 %v4826_v52 }
 0x1b2   :  { %4831 = vmatprep.subr.bf16.mxu1 %v4830_v53 }
 0x1b5   :  { %4833 = vmatpush3.bf16.msra.mxu1 %v4830_v53 }
 0x1b6   :  { %4835 = vmatprep.subr.bf16.mxu1 %v4834_v33 }
 0x1b9   :  { %4837 = vmatpush3.bf16.msra.mxu1 %v4834_v33  ;;  %v4866_v33 = vpack.c.bf16 %v6116_v17, %v6111_v12 }
 0x1ba   :  { %4839 = vmatprep.subr.bf16.mxu1 %v5986_v23 }
 0x1bd   :  { %4841 = vmatpush3.bf16.msra.mxu1 %v5986_v23  ;;  %v6167_v23 = vld [vmem:[%s7141_s5] sm:$0xff] }
 0x1be   :  { %4843 = vmatprep.subr.bf16.mxu1 %v6006_v34  ;;  %v7169_v43 = vand.u32 4294901760, %v6167_v23 }
 0x1c1   :  { %4845 = vmatpush3.bf16.msra.mxu1 %v6006_v34  ;;  %v6172_v34 = vld [vmem:[%s7141_s5 + $0x8] sm:$0xff] }
 0x1c2   :  { %4847 = vmatprep.subr.bf16.mxu1 %v6008_v0  ;;  %v7166_v20 = vand.u32 4294901760, %v6172_v34 }
 0x1c4   :  { %v6204_v52 = vpack.c.bf16 %v7166_v20, %v7169_v43  ;;  %v6245_v20 = vld [vmem:[%s7141_s5 + $0x48] sm:$0xff] }
 0x1c5   :  { %4849 = vmatpush3.bf16.msra.mxu1 %v6008_v0  ;;  %v6177_v0 = vld [vmem:[%s7141_s5 + $0x10] sm:$0xff] }
 0x1c6   :  { %4851 = vmatprep.subr.bf16.mxu1 %v6012_v63  ;;  %v7165_v51 = vand.u32 4294901760, %v6177_v0  ;;  %4979 = vmatprep.subr.bf16.mxu0 %v6204_v52 }
 0x1c7   :  { %4981 = vmatpush3.bf16.msra.mxu0 %v6204_v52 }
 0x1c8   :  { %3981 = vmatmul.mubr.f32.vlgmr.msra.gmra.mrb[0].mxu1 %v6063_v5  ;;  %v6212_v53 = vpack.c.bf16 %v7164_v54, %v7165_v51  ;;  %v1652_v54 = vand.u32 4294901760, %v6222_v38  ;;  %v6240_v51 = vld [vmem:[%s7141_s5 + $0x40] sm:$0xff] }
 0x1c9   :  { %3983 = vmatprep.mubr.f32.mxu1 %v6097_v36  ;;  %4853 = vmatpush3.bf16.msra.mxu1 %v6012_v63  ;;  %v4862_v63 = vpack.c.bf16 %v6080_v41, %v6075_v18  ;;  %v7218_v41 = vand.u32 4294901760, %v5982_v32 }
 0x1ca   :  { %4855 = vmatprep.subr.bf16.mxu1 %v4854_v27  ;;  %4983 = vmatprep.subr.bf16.mxu0 %v6212_v53 }
 0x1cb   :  { %4985 = vmatpush3.bf16.msra.mxu0 %v6212_v53 }
 0x1cc   :  { %3984 = vmatmul.mubr.f32.gmra.mrb[2].mxu1 %v6088_v15 }
 0x1cd   :  { %4857 = vmatpush3.bf16.msra.mxu1 %v4854_v27  ;;  %4018 = vmatprep.mubr.f32.mxu1 %v6086_v49  ;;  %v6233_v27 = vpack.c.bf16 %v7167_v11, %v7168_v59  ;;  %v1655_v11 = vand.u32 4294901760, %v6240_v51  ;;  %v1658_v59 = vand.u32 4294901760, %v6245_v20  ;;  %v7219_v49 = vand.u32 4294901760, %v5991_v22 }
 0x1ce   :  { %4859 = vmatprep.subr.bf16.mxu1 %v4858_v14 }
 0x1cf   :  { %4987 = vmatprep.subr.bf16.mxu0 %v6233_v27  ;;  %v6264_v43 = vpack.c.bf16 %v1658_v59, %v1655_v11 }
 0x1d0   :  { %4989 = vmatpush3.bf16.msra.mxu0 %v6233_v27 }
 0x1d1   :  { %4861 = vmatpush3.bf16.msra.mxu1 %v4858_v14  ;;  %v1649_v14 = vand.u32 4294901760, %v6217_v26 }
 0x1d2   :  { %4863 = vmatprep.subr.bf16.mxu1 %v4862_v63 }
 0x1d5   :  { %4865 = vmatpush3.bf16.msra.mxu1 %v4862_v63  ;;  %v6253_v63 = vpack.c.bf16 %v1652_v54, %v1649_v14 }
 0x1d6   :  { %4867 = vmatprep.subr.bf16.mxu1 %v4866_v33 }
 0x1d7   :  { %4991 = vmatprep.subr.bf16.mxu0 %v6253_v63 }
 0x1d8   :  { %4993 = vmatpush3.bf16.msra.mxu0 %v6253_v63 }
 0x1d9   :  { %4869 = vmatpush3.bf16.msra.mxu1 %v4866_v33  ;;  %4995 = vmatprep.subr.bf16.mxu0 %v6264_v43 }
 0x1da   :  { %4871 = vmatprep.subr.bf16.mxu1 %v6016_v2 }
 0x1dc   :  { %4997 = vmatpush3.bf16.msra.mxu0 %v6264_v43 }
 0x1dd   :  { %4873 = vmatpush3.bf16.msra.mxu1 %v6016_v2  ;;  %v4914_v2 = vpack.c.bf16 %v971_v60, %v964_v7  ;;  %v4922_v7 = vpack.c.bf16 %v7211_v19, %v7210_v6  ;;  %v7212_v60 = vand.u32 4294901760, %v6103_v61 }
 0x1de   :  { %4875 = vmatprep.subr.bf16.mxu1 %v6020_v4 }
 0x1e1   :  { %4877 = vmatpush3.bf16.msra.mxu1 %v6020_v4  ;;  %v4918_v4 = vpack.c.bf16 %v985_v45, %v978_v39  ;;  %v4930_v39 = vpack.c.bf16 %v1027_v37, %v1020_v10  ;;  %v7215_v45 = vand.u32 4294901760, %v5968_v57 }
 0x1e2   :  { %4879 = vmatprep.subr.bf16.mxu1 %v6024_v58 }
 0x1e3   :  { %v4934_v40 = vpack.c.bf16 %v7216_v35, %v7215_v45 }
 0x1e5   :  { %4881 = vmatpush3.bf16.msra.mxu1 %v6024_v58  ;;  %v7213_v58 = vand.u32 4294901760, %v6075_v18  ;;  %v7217_v18 = vand.u32 4294901760, %v5980_v50  ;;  %v7221_v50 = vand.u32 4294901760, %v6167_v23 }
 0x1e6   :  { %4883 = vmatprep.subr.bf16.mxu1 %v5780_v62 }
 0x1e7   :  { %v4926_v44 = vpack.c.bf16 %v7214_v21, %v7213_v58  ;;  %v6378_v32 = vsub.f32 %v6167_v23, %v7221_v50 }
 0x1e8   :  { %4019 = vmatmul.mubr.f32.vlgmr.msra.gmra.mrb[0].mxu1 %v6083_v56  ;;  %v4938_v56 = vpack.c.bf16 %v7218_v41, %v7217_v18 }
 0x1e9   :  { %4021 = vmatprep.mubr.f32.mxu1 %v6119_v46  ;;  %4885 = vmatpush3.bf16.msra.mxu1 %v5780_v62 }
 0x1ea   :  { %4887 = vmatprep.subr.bf16.mxu1 %v5788_v9 }
 0x1ec   :  { %4022 = vmatmul.mubr.f32.gmra.mrb[2].mxu1 %v6103_v61  ;;  %v1754_v61 = vand.u32 4294901760, %v6378_v32 }
 0x1ed   :  { %4889 = vmatpush3.bf16.msra.mxu1 %v5788_v9  ;;  %4056 = vmatprep.mubr.f32.mxu1 %v923_v16 }
 0x1ee   :  { %4891 = vmatprep.subr.bf16.mxu1 %v5809_v25  ;;  %v1755_v46 = vsub.f32 %v6378_v32, %v1754_v61 }
 0x1f0   :  { %v1756_v10 = vand.u32 4294901760, %v1755_v46 }
 0x1f1   :  { %4893 = vmatpush3.bf16.msra.mxu1 %v5809_v25 }
 0x1f2   :  { %4895 = vmatprep.subr.bf16.mxu1 %v5831_v47 }
 0x1f5   :  { %4897 = vmatpush3.bf16.msra.mxu1 %v5831_v47 }
 0x1f6   :  { %4899 = vmatprep.subr.bf16.mxu1 %v5843_v55 }
 0x1f9   :  { %4901 = vmatpush3.bf16.msra.mxu1 %v5843_v55 }
 0x1fa   :  { %4903 = vmatprep.subr.bf16.mxu1 %v5923_v28 }
 0x1fd   :  { %4905 = vmatpush3.bf16.msra.mxu1 %v5923_v28 }
 0x1fe   :  { %4907 = vmatprep.subr.bf16.mxu1 %v5933_v3 }
 0x201   :  { %4909 = vmatpush3.bf16.msra.mxu1 %v5933_v3 }
 0x202   :  { %4911 = vmatprep.subr.bf16.mxu1 %v5955_v8 }
 0x205   :  { %4913 = vmatpush3.bf16.msra.mxu1 %v5955_v8 }
 0x206   :  { %4915 = vmatprep.subr.bf16.mxu1 %v4914_v2 }
 0x208   :  { %4057 = vmatmul.mubr.f32.vlgmr.msra.gmra.mrb[0].mxu1 %v933_v30  ;;  %v7220_v30 = vand.u32 4294901760, %v5993_v48  ;;  %v1628_v48 = vld [vmem:[%s7141_s5 + $0x70] sm:$0xff] }
 0x209   :  { %4059 = vmatprep.mubr.f32.mxu1 %v943_v24  ;;  %4917 = vmatpush3.bf16.msra.mxu1 %v4914_v2 }
 0x20a   :  { %4919 = vmatprep.subr.bf16.mxu1 %v4918_v4  ;;  %v4942_v16 = vpack.c.bf16 %v7220_v30, %v7219_v49 }
 0x20c   :  { %4060 = vmatmul.mubr.f32.gmra.mrb[2].mxu1 %v7212_v60 }
 0x20d   :  { %4921 = vmatpush3.bf16.msra.mxu1 %v4918_v4  ;;  %4094 = vmatprep.mubr.f32.mxu1 %v6070_v13 }
 0x20e   :  { %4923 = vmatprep.subr.bf16.mxu1 %v4922_v7 }
 0x211   :  { %4925 = vmatpush3.bf16.msra.mxu1 %v4922_v7 }
 0x212   :  { %4927 = vmatprep.subr.bf16.mxu1 %v4926_v44 }
 0x215   :  { %4929 = vmatpush3.bf16.msra.mxu1 %v4926_v44 }
 0x216   :  { %4931 = vmatprep.subr.bf16.mxu1 %v4930_v39 }
 0x219   :  { %4933 = vmatpush3.bf16.msra.mxu1 %v4930_v39 }
 0x21a   :  { %4935 = vmatprep.subr.bf16.mxu1 %v4934_v40 }
 0x21d   :  { %4937 = vmatpush3.bf16.msra.mxu1 %v4934_v40 }
 0x21e   :  { %4939 = vmatprep.subr.bf16.mxu1 %v4938_v56 }
 0x221   :  { %4941 = vmatpush3.bf16.msra.mxu1 %v4938_v56 }
 0x222   :  { %4943 = vmatprep.subr.bf16.mxu1 %v4942_v16 }
 0x225   :  { %4945 = vmatpush3.bf16.msra.mxu1 %v4942_v16 }
 0x226   :  { %4947 = vmatprep.subr.bf16.mxu1 %v5780_v62 }
 0x228   :  { %4095 = vmatmul.mubr.f32.vlgmr.msra.gmra.mrb[0].mxu1 %v6063_v5 }
 0x229   :  { %4097 = vmatprep.mubr.f32.mxu1 %v6097_v36  ;;  %4949 = vmatpush3.bf16.msra.mxu1 %v5780_v62  ;;  %v1624_v62 = vld [vmem:[%s7141_s5 + $0x50] sm:$0xff] }
 0x22a   :  { %4951 = vmatprep.subr.bf16.mxu1 %v5788_v9 }
 0x22c   :  { %4098 = vmatmul.mubr.f32.gmra.mrb[2].mxu1 %v6088_v15 }
 0x22d   :  { %4953 = vmatpush3.bf16.msra.mxu1 %v5788_v9  ;;  %4132 = vmatprep.mubr.f32.mxu1 %v6070_v13  ;;  %v1625_v9 = vld [vmem:[%s7141_s5 + $0x58] sm:$0xff]  ;;  %v1673_v13 = vand.u32 4294901760, %v1628_v48 }
 0x22e   :  { %4955 = vmatprep.subr.bf16.mxu1 %v5809_v25 }
 0x22f   :  { %v6431_v40 = vsub.f32 %v1628_v48, %v1673_v13  ;;  %v7223_v48 = vand.u32 4294901760, %v6177_v0 }
 0x231   :  { %4957 = vmatpush3.bf16.msra.mxu1 %v5809_v25  ;;  %v1661_v25 = vand.u32 4294901760, %v1624_v62  ;;  %v7171_v49 = vand.u32 4294901760, %v6431_v40 }
 0x232   :  { %4959 = vmatprep.subr.bf16.mxu1 %v5831_v47 }
 0x235   :  { %4961 = vmatpush3.bf16.msra.mxu1 %v5831_v47  ;;  %v1664_v47 = vand.u32 4294901760, %v1625_v9 }
 0x236   :  { %4963 = vmatprep.subr.bf16.mxu1 %v5843_v55 }
 0x237   :  { %v6410_v33 = vsub.f32 %v1625_v9, %v1664_v47 }
 0x239   :  { %4965 = vmatpush3.bf16.msra.mxu1 %v5843_v55  ;;  %v6363_v55 = vpack.c.bf16 %v1664_v47, %v1661_v25  ;;  %v7174_v4 = vand.u32 4294901760, %v6410_v33 }
 0x23a   :  { %4967 = vmatprep.subr.bf16.mxu1 %v5923_v28 }
 0x23b   :  { %4999 = vmatprep.subr.bf16.mxu0 %v6363_v55  ;;  %v1832_v19 = vsub.f32 %v6410_v33, %v7174_v4 }
 0x23c   :  { %5001 = vmatpush3.bf16.msra.mxu0 %v6363_v55 }
 0x23d   :  { %4969 = vmatpush3.bf16.msra.mxu1 %v5923_v28  ;;  %v1626_v28 = vld [vmem:[%s7141_s5 + $0x60] sm:$0xff]  ;;  %v1833_v21 = vand.u32 4294901760, %v1832_v19 }
 0x23e   :  { %4971 = vmatprep.subr.bf16.mxu1 %v5933_v3 }
 0x241   :  { %4973 = vmatpush3.bf16.msra.mxu1 %v5933_v3  ;;  %v1627_v3 = vld [vmem:[%s7141_s5 + $0x68] sm:$0xff] }
 0x242   :  { %4975 = vmatprep.subr.bf16.mxu1 %v5955_v8  ;;  %v1670_v57 = vand.u32 4294901760, %v1627_v3 }
 0x244   :  { %v6422_v60 = vsub.f32 %v1627_v3, %v1670_v57 }
 0x245   :  { %4977 = vmatpush3.bf16.msra.mxu1 %v5955_v8  ;;  %v1667_v8 = vand.u32 4294901760, %v1626_v28 }
 0x246   :  { %v7172_v39 = vand.u32 4294901760, %v6422_v60 }
 0x247   :  { %v6373_v1 = vpack.c.bf16 %v1670_v57, %v1667_v8  ;;  %v6420_v7 = vsub.f32 %v1626_v28, %v1667_v8 }
 0x248   :  { %4133 = vmatmul.mubr.f32.vlgmr.msra.gmra.mrb[0].mxu1 %v6063_v5  ;;  %v1629_v5 = vld [vmem:[%s7141_s5 + $0x78] sm:$0xff]  ;;  %v1846_v41 = vsub.f32 %v6422_v60, %v7172_v39 }
 0x249   :  { %4135 = vmatprep.mubr.f32.mxu1 %v6097_v36  ;;  %5003 = vmatprep.subr.bf16.mxu0 %v6373_v1  ;;  %v1676_v36 = vand.u32 4294901760, %v1629_v5  ;;  %v7173_v44 = vand.u32 4294901760, %v6420_v7  ;;  %v6460_v50 = vpack.c.bf16 %v6422_v60, %v6420_v7 }
 0x24a   :  { %5005 = vmatpush3.bf16.msra.mxu0 %v6373_v1  ;;  %v1847_v16 = vand.u32 4294901760, %v1846_v41 }
 0x24b   :  { %v6395_v17 = vpack.c.bf16 %v1676_v36, %v1673_v13  ;;  %v1839_v35 = vsub.f32 %v6420_v7, %v7173_v44  ;;  %v6433_v18 = vsub.f32 %v1629_v5, %v1676_v36  ;;  %v6469_v5 = vsub.f32 %v6177_v0, %v7223_v48 }
 0x24c   :  { %4136 = vmatmul.mubr.f32.gmra.mrb[2].mxu1 %v6088_v15  ;;  %v7222_v15 = vand.u32 4294901760, %v6172_v34  ;;  %v7224_v13 = vand.u32 4294901760, %v6186_v42 }
 0x24d   :  { %5007 = vmatprep.subr.bf16.mxu0 %v6395_v17  ;;  %v1840_v56 = vand.u32 4294901760, %v1839_v35  ;;  %v7170_v30 = vand.u32 4294901760, %v6433_v18  ;;  %v1768_v46 = vand.u32 4294901760, %v6469_v5 }
 0x24e   :  { %v6383_v22 = vsub.f32 %v6172_v34, %v7222_v15  ;;  %5009 = vmatpush3.bf16.msra.mxu0 %v6395_v17  ;;  %v6408_v34 = vsub.f32 %v1624_v62, %v1661_v25  ;;  %v1853_v62 = vsub.f32 %v6431_v40, %v7171_v49  ;;  %v6464_v15 = vpack.c.bf16 %v6433_v18, %v6431_v40 }
 0x24f   :  { %v1860_v9 = vsub.f32 %v6433_v18, %v7170_v30  ;;  %v6446_v25 = vpack.c.bf16 %v1847_v16, %v1840_v56  ;;  %v6474_v36 = vsub.f32 %v6186_v42, %v7224_v13  ;;  %v1769_v42 = vsub.f32 %v6469_v5, %v1768_v46 }
 0x250   :  { %v1761_v12 = vand.u32 4294901760, %v6383_v22  ;;  %v7175_v2 = vand.u32 4294901760, %v6408_v34  ;;  %v1854_v47 = vand.u32 4294901760, %v1853_v62  ;;  %v6452_v8 = vpack.c.bf16 %v6383_v22, %v6378_v32 }
 0x251   :  { %v1861_v28 = vand.u32 4294901760, %v1860_v9  ;;  %v6456_v57 = vpack.c.bf16 %v6410_v33, %v6408_v34  ;;  %v6503_v9 = vsub.f32 %v6217_v26, %v1649_v14  ;;  %v6544_v49 = vsub.f32 %v6245_v20, %v1658_v59 }
 0x252   :  { %v1762_v24 = vsub.f32 %v6383_v22, %v1761_v12  ;;  %v1825_v6 = vsub.f32 %v6408_v34, %v7175_v2 }
 0x253   :  { %v6448_v3 = vpack.c.bf16 %v1861_v28, %v1854_v47  ;;  %v6508_v47 = vsub.f32 %v6222_v38, %v1652_v54 }
 0x254   :  { %v1763_v37 = vand.u32 4294901760, %v1762_v24  ;;  %v1826_v58 = vand.u32 4294901760, %v1825_v6  ;;  %v1775_v24 = vand.u32 4294901760, %v6474_v36  ;;  %v7226_v6 = vand.u32 4294901760, %v6197_v29 }
 0x256   :  { %v6405_v23 = vpack.c.bf16 %v1763_v37, %v1756_v10  ;;  %v6426_v45 = vpack.c.bf16 %v1833_v21, %v1826_v58  ;;  %v7225_v10 = vand.u32 4294901760, %v6192_v31  ;;  %v6486_v19 = vsub.f32 %v6197_v29, %v7226_v6 }
 0x257   :  { %v1776_v41 = vsub.f32 %v6474_v36, %v1775_v24 }
 0x258   :  { %5011 = vmatprep.subr.bf16.mxu0 %v6405_v23  ;;  %v6481_v37 = vsub.f32 %v6192_v31, %v7225_v10  ;;  %v7176_v16 = vand.u32 4294901760, %v6486_v19  ;;  %v7228_v22 = vand.u32 4294901760, %v6486_v19 }
 0x25a   :  { %v7177_v31 = vand.u32 4294901760, %v6481_v37  ;;  %v1790_v38 = vsub.f32 %v6486_v19, %v7176_v16  ;;  %v7227_v32 = vand.u32 4294901760, %v6481_v37 }
 0x25c   :  { %v1783_v54 = vsub.f32 %v6481_v37, %v7177_v31  ;;  %v1791_v16 = vand.u32 4294901760, %v1790_v38 }
 0x25e   :  { %v1784_v2 = vand.u32 4294901760, %v1783_v54 }
 0x260   :  { %v5018_v38 = vpack.c.bf16 %v1791_v16, %v1784_v2 }
 0x31b   :  { %v4134_v0 = vpop.f32.mrb[0].mxu1 }
 0x31c   :  { %v1611_v58 = vmax.f32 %v4134_v0, 0.0  ;;  %v1588_v21 = vpop.f32.mrb[1].mxu1  ;;  %v1770_v0 = vand.u32 4294901760, %v1769_v42  ;;  %v7178_v42 = vand.u32 4294901760, %v6508_v47 }
 0x31d   :  { %v1610_v35 = vmax.f32 %v1588_v21, 0.0  ;;  %v1777_v21 = vand.u32 4294901760, %v1776_v41 }
 0x31e   :  { %v6494_v56 = vand.u32 4294901760, %v1611_v58  ;;  %v1804_v59 = vsub.f32 %v6508_v47, %v7178_v42 }
 0x31f   :  { %v6498_v29 = vand.u32 4294901760, %v1610_v35  ;;  %v4137_v62 = vpop.f32.mrb[2].mxu1  ;;  %v5014_v4 = vpack.c.bf16 %v1777_v21, %v1770_v0  ;;  %v1817_v21 = vand.u32 4294901760, %v6544_v49 }
 0x320   :  { %v6511_v28 = vsub.f32 %v1611_v58, %v6494_v56  ;;  %v1613_v48 = vmax.f32 %v4137_v62, 0.0  ;;  %v1600_v13 = vpop.f32.mrb[3].mxu1 }
 0x321   :  { %v6514_v10 = vsub.f32 %v1610_v35, %v6498_v29  ;;  %v1612_v6 = vmax.f32 %v1600_v13, 0.0  ;;  %v7179_v35 = vand.u32 4294901760, %v6503_v9  ;;  %v6539_v13 = vsub.f32 %v6240_v51, %v1655_v11 }
 0x322   :  { %v1723_v30 = vand.u32 4294901760, %v6511_v28  ;;  %v6517_v26 = vand.u32 4294901760, %v1613_v48 }
 0x323   :  { %v6525_v14 = vand.u32 4294901760, %v1612_v6  ;;  %v1713_v58 = vand.u32 4294901760, %v6514_v10  ;;  %v1797_v20 = vsub.f32 %v6503_v9, %v7179_v35  ;;  %v1810_v0 = vand.u32 4294901760, %v6539_v13 }
 0x324   :  { %v1724_v41 = vsub.f32 %v6511_v28, %v1723_v30  ;;  %v6534_v62 = vsub.f32 %v1613_v48, %v6517_v26  ;;  %v1805_v35 = vand.u32 4294901760, %v1804_v59  ;;  %v6614_v59 = vld [vmem:[%s7142_s6 + $0x18] sm:$0xff] }
 0x325   :  { %v6547_v39 = vsub.f32 %v1612_v6, %v6525_v14  ;;  %v1714_v44 = vsub.f32 %v6514_v10, %v1713_v58  ;;  %v1798_v42 = vand.u32 4294901760, %v1797_v20 }
 0x326   :  { %v7180_v48 = vand.u32 4294901760, %v6534_v62  ;;  %v1725_v11 = vand.u32 4294901760, %v1724_v41 }
 0x327   :  { %v1715_v31 = vand.u32 4294901760, %v1714_v44  ;;  %v1733_v51 = vand.u32 4294901760, %v6547_v39 }
 0x328   :  { %v1744_v6 = vsub.f32 %v6534_v62, %v7180_v48  ;;  %v1811_v48 = vsub.f32 %v6539_v13, %v1810_v0 }
 0x329   :  { %4170 = vmatprep.mubr.f32.mxu0 %v1715_v31  ;;  %v1734_v44 = vsub.f32 %v6547_v39, %v1733_v51  ;;  %v1818_v31 = vsub.f32 %v6544_v49, %v1817_v21 }
 0x32a   :  { %4171 = vmatmul.mubr.f32.vlgmr.msra.gmra.mrb[4].mxu0 %v1725_v11  ;;  %v1745_v41 = vand.u32 4294901760, %v1744_v6  ;;  %v1812_v2 = vand.u32 4294901760, %v1811_v48  ;;  %v6620_v6 = vld [vmem:[%s7142_s6 + $0x20] sm:$0xff] }
 0x32b   :  { %5013 = vmatpush3.bf16.msra.mxu0 %v6405_v23  ;;  %v1735_v54 = vand.u32 4294901760, %v1734_v44  ;;  %v5022_v23 = vpack.c.bf16 %v1805_v35, %v1798_v42  ;;  %v1819_v16 = vand.u32 4294901760, %v1818_v31  ;;  %v5054_v35 = vpack.c.bf16 %v6508_v47, %v6503_v9  ;;  %v6625_v44 = vld [vmem:[%s7142_s6 + $0x28] sm:$0xff] }
 0x32c   :  { %5015 = vmatprep.subr.bf16.mxu0 %v5014_v4  ;;  %v7184_v31 = vand.u32 4294901760, %v6625_v44 }
 0x32d   :  { %4173 = vmatprep.mubr.f32.mxu0 %v1735_v54  ;;  %v5026_v20 = vpack.c.bf16 %v1819_v16, %v1812_v2  ;;  %v7181_v54 = vand.u32 4294901760, %v6614_v59  ;;  %v6645_v2 = vld [vmem:[%s7142_s6 + $0x30] sm:$0xff]  ;;  %v6650_v16 = vld [vmem:[%s7142_s6 + $0x38] sm:$0xff] }
 0x32e   :  { %4174 = vmatmul.mubr.f32.gmra.mrb[6].mxu0 %v1745_v41  ;;  %v7185_v41 = vand.u32 4294901760, %v6620_v6 }
 0x32f   :  { %5017 = vmatpush3.bf16.msra.mxu0 %v5014_v4  ;;  %4208 = vmatprep.mubr.f32.mxu0 %v6498_v29  ;;  %v5046_v4 = vpack.c.bf16 %v6474_v36, %v6469_v5  ;;  %v5122_v5 = vpack.c.bf16 %v1817_v21, %v1810_v0  ;;  %v7232_v36 = vand.u32 4294901760, %v6408_v34 }
 0x330   :  { %5019 = vmatprep.subr.bf16.mxu0 %v5018_v38 }
 0x333   :  { %5021 = vmatpush3.bf16.msra.mxu0 %v5018_v38 }
 0x334   :  { %5023 = vmatprep.subr.bf16.mxu0 %v5022_v23 }
 0x337   :  { %5025 = vmatpush3.bf16.msra.mxu0 %v5022_v23 }
 0x338   :  { %5027 = vmatprep.subr.bf16.mxu0 %v5026_v20 }
 0x33b   :  { %5029 = vmatpush3.bf16.msra.mxu0 %v5026_v20  ;;  %v5058_v20 = vpack.c.bf16 %v6544_v49, %v6539_v13  ;;  %v7237_v49 = vand.u32 4294901760, %v6433_v18 }
 0x33c   :  { %5031 = vmatprep.subr.bf16.mxu0 %v6426_v45 }
 0x33f   :  { %5033 = vmatpush3.bf16.msra.mxu0 %v6426_v45  ;;  %v5050_v45 = vpack.c.bf16 %v6486_v19, %v6481_v37  ;;  %v7234_v37 = vand.u32 4294901760, %v6420_v7  ;;  %v7235_v19 = vand.u32 4294901760, %v6422_v60 }
 0x340   :  { %5035 = vmatprep.subr.bf16.mxu0 %v6446_v25 }
 0x343   :  { %5037 = vmatpush3.bf16.msra.mxu0 %v6446_v25  ;;  %v6595_v25 = vld [vmem:[%s7142_s6] sm:$0xff] }
 0x344   :  { %5039 = vmatprep.subr.bf16.mxu0 %v6448_v3  ;;  %v7186_v42 = vand.u32 4294901760, %v6595_v25  ;;  %v7238_v7 = vand.u32 4294901760, %v6595_v25 }
 0x346   :  { %v6806_v60 = vsub.f32 %v6595_v25, %v7238_v7 }
 0x347   :  { %5041 = vmatpush3.bf16.msra.mxu0 %v6448_v3  ;;  %v6600_v3 = vld [vmem:[%s7142_s6 + $0x8] sm:$0xff] }
 0x348   :  { %5043 = vmatprep.subr.bf16.mxu0 %v6452_v8  ;;  %v7183_v48 = vand.u32 4294901760, %v6600_v3 }
 0x34a   :  { %4209 = vmatmul.mubr.f32.vlgmr.msra.gmra.mrb[4].mxu0 %v6494_v56  ;;  %v6632_v38 = vpack.c.bf16 %v7183_v48, %v7186_v42  ;;  %v6673_v48 = vld [vmem:[%s7142_s6 + $0x48] sm:$0xff] }
 0x34b   :  { %4211 = vmatprep.mubr.f32.mxu0 %v6525_v14  ;;  %5045 = vmatpush3.bf16.msra.mxu0 %v6452_v8  ;;  %v6605_v8 = vld [vmem:[%s7142_s6 + $0x10] sm:$0xff] }
 0x34c   :  { %5047 = vmatprep.subr.bf16.mxu0 %v5046_v4  ;;  %v7182_v11 = vand.u32 4294901760, %v6605_v8  ;;  %5171 = vmatprep.subr.bf16.mxu1 %v6632_v38 }
 0x34d   :  { %5173 = vmatpush3.bf16.msra.mxu1 %v6632_v38 }
 0x34e   :  { %4212 = vmatmul.mubr.f32.gmra.mrb[6].mxu0 %v6517_v26  ;;  %v6640_v23 = vpack.c.bf16 %v7181_v54, %v7182_v11  ;;  %v2446_v54 = vand.u32 4294901760, %v6650_v16  ;;  %v6668_v11 = vld [vmem:[%s7142_s6 + $0x40] sm:$0xff] }
 0x34f   :  { %5049 = vmatpush3.bf16.msra.mxu0 %v5046_v4  ;;  %4246 = vmatprep.mubr.f32.mxu0 %v6514_v10  ;;  %v6661_v4 = vpack.c.bf16 %v7184_v31, %v7185_v41  ;;  %v2449_v31 = vand.u32 4294901760, %v6668_v11  ;;  %v2452_v41 = vand.u32 4294901760, %v6673_v48 }
 0x350   :  { %5051 = vmatprep.subr.bf16.mxu0 %v5050_v45  ;;  %5175 = vmatprep.subr.bf16.mxu1 %v6640_v23 }
 0x351   :  { %5177 = vmatpush3.bf16.msra.mxu1 %v6640_v23  ;;  %v6692_v42 = vpack.c.bf16 %v2452_v41, %v2449_v31 }
 0x352   :  { %5179 = vmatprep.subr.bf16.mxu1 %v6661_v4 }
 0x353   :  { %5053 = vmatpush3.bf16.msra.mxu0 %v5050_v45  ;;  %v2443_v45 = vand.u32 4294901760, %v6645_v2 }
 0x354   :  { %5055 = vmatprep.subr.bf16.mxu0 %v5054_v35 }
 0x355   :  { %5181 = vmatpush3.bf16.msra.mxu1 %v6661_v4 }
 0x357   :  { %5057 = vmatpush3.bf16.msra.mxu0 %v5054_v35  ;;  %v6681_v35 = vpack.c.bf16 %v2446_v54, %v2443_v45 }
 0x358   :  { %5059 = vmatprep.subr.bf16.mxu0 %v5058_v20 }
 0x359   :  { %5183 = vmatprep.subr.bf16.mxu1 %v6681_v35 }
 0x35a   :  { %5185 = vmatpush3.bf16.msra.mxu1 %v6681_v35 }
 0x35b   :  { %5061 = vmatpush3.bf16.msra.mxu0 %v5058_v20  ;;  %5187 = vmatprep.subr.bf16.mxu1 %v6692_v42 }
 0x35c   :  { %5063 = vmatprep.subr.bf16.mxu0 %v6456_v57 }
 0x35e   :  { %5189 = vmatpush3.bf16.msra.mxu1 %v6692_v42 }
 0x35f   :  { %5065 = vmatpush3.bf16.msra.mxu0 %v6456_v57  ;;  %v5106_v57 = vpack.c.bf16 %v1761_v12, %v1754_v61  ;;  %v5114_v61 = vpack.c.bf16 %v7228_v22, %v7227_v32  ;;  %v7229_v12 = vand.u32 4294901760, %v6534_v62 }
 0x360   :  { %5067 = vmatprep.subr.bf16.mxu0 %v6460_v50 }
 0x363   :  { %5069 = vmatpush3.bf16.msra.mxu0 %v6460_v50  ;;  %v5110_v50 = vpack.c.bf16 %v1775_v24, %v1768_v46  ;;  %v7233_v46 = vand.u32 4294901760, %v6410_v33 }
 0x364   :  { %5071 = vmatprep.subr.bf16.mxu0 %v6464_v15 }
 0x365   :  { %v5126_v24 = vpack.c.bf16 %v7233_v46, %v7232_v36 }
 0x367   :  { %5073 = vmatpush3.bf16.msra.mxu0 %v6464_v15  ;;  %v7230_v15 = vand.u32 4294901760, %v6503_v9  ;;  %v5130_v9 = vpack.c.bf16 %v7235_v19, %v7234_v37 }
 0x368   :  { %5075 = vmatprep.subr.bf16.mxu0 %v6204_v52 }
 0x36a   :  { %4247 = vmatmul.mubr.f32.vlgmr.msra.gmra.mrb[4].mxu0 %v6511_v28 }
 0x36b   :  { %4249 = vmatprep.mubr.f32.mxu0 %v6547_v39  ;;  %5077 = vmatpush3.bf16.msra.mxu0 %v6204_v52 }
 0x36c   :  { %5079 = vmatprep.subr.bf16.mxu0 %v6212_v53 }
 0x36e   :  { %4250 = vmatmul.mubr.f32.gmra.mrb[6].mxu0 %v6534_v62 }
 0x36f   :  { %5081 = vmatpush3.bf16.msra.mxu0 %v6212_v53  ;;  %4284 = vmatprep.mubr.f32.mxu0 %v1713_v58 }
 0x370   :  { %5083 = vmatprep.subr.bf16.mxu0 %v6233_v27 }
 0x373   :  { %5085 = vmatpush3.bf16.msra.mxu0 %v6233_v27 }
 0x374   :  { %5087 = vmatprep.subr.bf16.mxu0 %v6253_v63 }
 0x377   :  { %5089 = vmatpush3.bf16.msra.mxu0 %v6253_v63 }
 0x378   :  { %5091 = vmatprep.subr.bf16.mxu0 %v6264_v43 }
 0x37b   :  { %5093 = vmatpush3.bf16.msra.mxu0 %v6264_v43 }
 0x37c   :  { %5095 = vmatprep.subr.bf16.mxu0 %v6363_v55 }
 0x37f   :  { %5097 = vmatpush3.bf16.msra.mxu0 %v6363_v55 }
 0x380   :  { %5099 = vmatprep.subr.bf16.mxu0 %v6373_v1 }
 0x383   :  { %5101 = vmatpush3.bf16.msra.mxu0 %v6373_v1 }
 0x384   :  { %5103 = vmatprep.subr.bf16.mxu0 %v6395_v17 }
 0x387   :  { %5105 = vmatpush3.bf16.msra.mxu0 %v6395_v17 }
 0x388   :  { %5107 = vmatprep.subr.bf16.mxu0 %v5106_v57 }
 0x38a   :  { %4285 = vmatmul.mubr.f32.vlgmr.msra.gmra.mrb[4].mxu0 %v1723_v30  ;;  %v7231_v30 = vand.u32 4294901760, %v6508_v47  ;;  %v7236_v47 = vand.u32 4294901760, %v6431_v40  ;;  %v7239_v40 = vand.u32 4294901760, %v6600_v3 }
 0x38b   :  { %4287 = vmatprep.mubr.f32.mxu0 %v1733_v51  ;;  %5109 = vmatpush3.bf16.msra.mxu0 %v5106_v57 }
 0x38c   :  { %5111 = vmatprep.subr.bf16.mxu0 %v5110_v50  ;;  %v5118_v39 = vpack.c.bf16 %v7231_v30, %v7230_v15  ;;  %v5134_v28 = vpack.c.bf16 %v7237_v49, %v7236_v47  ;;  %v6811_v18 = vsub.f32 %v6600_v3, %v7239_v40 }
 0x38e   :  { %4288 = vmatmul.mubr.f32.gmra.mrb[6].mxu0 %v7229_v12  ;;  %v2555_v58 = vand.u32 4294901760, %v6811_v18 }
 0x38f   :  { %5113 = vmatpush3.bf16.msra.mxu0 %v5110_v50  ;;  %4322 = vmatprep.mubr.f32.mxu0 %v6498_v29 }
 0x390   :  { %5115 = vmatprep.subr.bf16.mxu0 %v5114_v61  ;;  %v2556_v51 = vsub.f32 %v6811_v18, %v2555_v58 }
 0x392   :  { %v2557_v21 = vand.u32 4294901760, %v2556_v51 }
 0x393   :  { %5117 = vmatpush3.bf16.msra.mxu0 %v5114_v61 }
 0x394   :  { %5119 = vmatprep.subr.bf16.mxu0 %v5118_v39 }
 0x397   :  { %5121 = vmatpush3.bf16.msra.mxu0 %v5118_v39 }
 0x398   :  { %5123 = vmatprep.subr.bf16.mxu0 %v5122_v5 }
 0x39b   :  { %5125 = vmatpush3.bf16.msra.mxu0 %v5122_v5 }
 0x39c   :  { %5127 = vmatprep.subr.bf16.mxu0 %v5126_v24 }
 0x39f   :  { %5129 = vmatpush3.bf16.msra.mxu0 %v5126_v24 }
 0x3a0   :  { %5131 = vmatprep.subr.bf16.mxu0 %v5130_v9 }
 0x3a3   :  { %5133 = vmatpush3.bf16.msra.mxu0 %v5130_v9 }
 0x3a4   :  { %5135 = vmatprep.subr.bf16.mxu0 %v5134_v28 }
 0x3a7   :  { %5137 = vmatpush3.bf16.msra.mxu0 %v5134_v28 }
 0x3a8   :  { %5139 = vmatprep.subr.bf16.mxu0 %v6204_v52 }
 0x3aa   :  { %4323 = vmatmul.mubr.f32.vlgmr.msra.gmra.mrb[4].mxu0 %v6494_v56 }
 0x3ab   :  { %4325 = vmatprep.mubr.f32.mxu0 %v6525_v14  ;;  %5141 = vmatpush3.bf16.msra.mxu0 %v6204_v52  ;;  %v2419_v52 = vld [vmem:[%s7142_s6 + $0x58] sm:$0xff] }
 0x3ac   :  { %5143 = vmatprep.subr.bf16.mxu0 %v6212_v53 }
 0x3ae   :  { %4326 = vmatmul.mubr.f32.gmra.mrb[6].mxu0 %v6517_v26 }
 0x3af   :  { %5145 = vmatpush3.bf16.msra.mxu0 %v6212_v53  ;;  %4360 = vmatprep.mubr.f32.mxu0 %v6498_v29  ;;  %v2423_v29 = vld [vmem:[%s7142_s6 + $0x78] sm:$0xff] }
 0x3b0   :  { %5147 = vmatprep.subr.bf16.mxu0 %v6233_v27 }
 0x3b3   :  { %5149 = vmatpush3.bf16.msra.mxu0 %v6233_v27  ;;  %v2458_v27 = vand.u32 4294901760, %v2419_v52 }
 0x3b4   :  { %5151 = vmatprep.subr.bf16.mxu0 %v6253_v63 }
 0x3b5   :  { %v6838_v20 = vsub.f32 %v2419_v52, %v2458_v27 }
 0x3b7   :  { %5153 = vmatpush3.bf16.msra.mxu0 %v6253_v63  ;;  %v7191_v50 = vand.u32 4294901760, %v6838_v20 }
 0x3b8   :  { %5155 = vmatprep.subr.bf16.mxu0 %v6264_v43 }
 0x3b9   :  { %v2626_v22 = vsub.f32 %v6838_v20, %v7191_v50 }
 0x3bb   :  { %5157 = vmatpush3.bf16.msra.mxu0 %v6264_v43  ;;  %v2418_v43 = vld [vmem:[%s7142_s6 + $0x50] sm:$0xff]  ;;  %v2627_v30 = vand.u32 4294901760, %v2626_v22 }
 0x3bc   :  { %5159 = vmatprep.subr.bf16.mxu0 %v6363_v55  ;;  %v2455_v53 = vand.u32 4294901760, %v2418_v43 }
 0x3be   :  { %v6791_v63 = vpack.c.bf16 %v2458_v27, %v2455_v53  ;;  %v6836_v3 = vsub.f32 %v2418_v43, %v2455_v53 }
 0x3bf   :  { %5161 = vmatpush3.bf16.msra.mxu0 %v6363_v55  ;;  %v2420_v55 = vld [vmem:[%s7142_s6 + $0x60] sm:$0xff] }
 0x3c0   :  { %5163 = vmatprep.subr.bf16.mxu0 %v6373_v1  ;;  %5191 = vmatprep.subr.bf16.mxu1 %v6791_v63  ;;  %v7192_v57 = vand.u32 4294901760, %v6836_v3 }
 0x3c1   :  { %5193 = vmatpush3.bf16.msra.mxu1 %v6791_v63 }
 0x3c2   :  { %v2619_v32 = vsub.f32 %v6836_v3, %v7192_v57 }
 0x3c3   :  { %5165 = vmatpush3.bf16.msra.mxu0 %v6373_v1  ;;  %v2421_v1 = vld [vmem:[%s7142_s6 + $0x68] sm:$0xff] }
 0x3c4   :  { %5167 = vmatprep.subr.bf16.mxu0 %v6395_v17  ;;  %v2464_v34 = vand.u32 4294901760, %v2421_v1  ;;  %v2620_v15 = vand.u32 4294901760, %v2619_v32 }
 0x3c6   :  { %v6850_v12 = vsub.f32 %v2421_v1, %v2464_v34  ;;  %v6854_v36 = vpack.c.bf16 %v2627_v30, %v2620_v15 }
 0x3c7   :  { %5169 = vmatpush3.bf16.msra.mxu0 %v6395_v17  ;;  %v2461_v17 = vand.u32 4294901760, %v2420_v55 }
 0x3c8   :  { %v7189_v5 = vand.u32 4294901760, %v6850_v12 }
 0x3c9   :  { %v6801_v33 = vpack.c.bf16 %v2464_v34, %v2461_v17  ;;  %v6848_v61 = vsub.f32 %v2420_v55, %v2461_v17  ;;  %v6880_v17 = vpack.c.bf16 %v6811_v18, %v6806_v60  ;;  %v6884_v34 = vpack.c.bf16 %v6838_v20, %v6836_v3 }
 0x3ca   :  { %4361 = vmatmul.mubr.f32.vlgmr.msra.gmra.mrb[4].mxu0 %v6494_v56  ;;  %v2422_v56 = vld [vmem:[%s7142_s6 + $0x70] sm:$0xff]  ;;  %v2640_v19 = vsub.f32 %v6850_v12, %v7189_v5 }
 0x3cb   :  { %4363 = vmatprep.mubr.f32.mxu0 %v6525_v14  ;;  %5195 = vmatprep.subr.bf16.mxu1 %v6801_v33  ;;  %v2467_v10 = vand.u32 4294901760, %v2422_v56  ;;  %v2548_v14 = vand.u32 4294901760, %v6806_v60  ;;  %v7190_v39 = vand.u32 4294901760, %v6848_v61  ;;  %v6888_v7 = vpack.c.bf16 %v6850_v12, %v6848_v61 }
 0x3cc   :  { %5197 = vmatpush3.bf16.msra.mxu1 %v6801_v33  ;;  %v2641_v28 = vand.u32 4294901760, %v2640_v19 }
 0x3cd   :  { %v2549_v13 = vsub.f32 %v6806_v60, %v2548_v14  ;;  %v2633_v46 = vsub.f32 %v6848_v61, %v7190_v39  ;;  %v6859_v24 = vsub.f32 %v2422_v56, %v2467_v10  ;;  %v7240_v56 = vand.u32 4294901760, %v6605_v8 }
 0x3ce   :  { %4364 = vmatmul.mubr.f32.gmra.mrb[6].mxu0 %v6517_v26  ;;  %v2470_v26 = vand.u32 4294901760, %v2423_v29 }
 0x3cf   :  { %v2550_v0 = vand.u32 4294901760, %v2549_v13  ;;  %v2634_v9 = vand.u32 4294901760, %v2633_v46  ;;  %v7188_v47 = vand.u32 4294901760, %v6859_v24  ;;  %v2401_v13 = vld [vmem:[%s7143_s2 + $0x8] sm:$0xff] }
 0x3d0   :  { %v6823_v62 = vpack.c.bf16 %v2470_v26, %v2467_v10  ;;  %v6861_v37 = vsub.f32 %v2423_v29, %v2470_v26  ;;  %v6897_v29 = vsub.f32 %v6605_v8, %v7240_v56  ;;  %v7241_v10 = vand.u32 4294901760, %v6614_v59 }
 0x3d1   :  { %v6833_v25 = vpack.c.bf16 %v2557_v21, %v2550_v0  ;;  %v2647_v43 = vsub.f32 %v6859_v24, %v7188_v47  ;;  %v6874_v53 = vpack.c.bf16 %v2641_v28, %v2634_v9  ;;  %v2400_v21 = vld [vmem:[%s7143_s2] sm:$0xff]  ;;  %v7242_v8 = vand.u32 4294901760, %v6620_v6  ;;  %v2403_v9 = vld [vmem:[%s7143_s2 + $0x18] sm:$0xff] }
 0x3d2   :  { %5199 = vmatprep.subr.bf16.mxu1 %v6823_v62  ;;  %v7187_v49 = vand.u32 4294901760, %v6861_v37  ;;  %v6892_v40 = vpack.c.bf16 %v6861_v37, %v6859_v24  ;;  %v6902_v26 = vsub.f32 %v6614_v59, %v7241_v10  ;;  %v2562_v51 = vand.u32 4294901760, %v6897_v29 }
 0x3d3   :  { %5201 = vmatpush3.bf16.msra.mxu1 %v6823_v62  ;;  %v2648_v27 = vand.u32 4294901760, %v2647_v43  ;;  %v6915_v32 = vsub.f32 %v6620_v6, %v7242_v8  ;;  %v7243_v59 = vand.u32 4294901760, %v6625_v44  ;;  %v6943_v10 = vsub.f32 %v6645_v2, %v2443_v45 }
 0x3d4   :  { %5203 = vmatprep.subr.bf16.mxu1 %v6833_v25  ;;  %v2654_v52 = vsub.f32 %v6861_v37, %v7187_v49  ;;  %v2569_v0 = vand.u32 4294901760, %v6902_v26  ;;  %v2563_v28 = vsub.f32 %v6897_v29, %v2562_v51 }
 0x3d5   :  { %v6920_v22 = vsub.f32 %v6625_v44, %v7243_v59  ;;  %v2402_v44 = vld [vmem:[%s7143_s2 + $0x10] sm:$0xff]  ;;  %v7244_v60 = vand.u32 4294901760, %v6915_v32 }
 0x3d6   :  { %v2655_v55 = vand.u32 4294901760, %v2654_v52  ;;  %v2570_v6 = vsub.f32 %v6902_v26, %v2569_v0  ;;  %v7194_v52 = vand.u32 4294901760, %v6915_v32  ;;  %v2564_v49 = vand.u32 4294901760, %v2563_v28 }
 0x3d7   :  { %v7245_v18 = vand.u32 4294901760, %v6920_v22 }
 0x3d8   :  { %v6876_v1 = vpack.c.bf16 %v2655_v55, %v2648_v27  ;;  %v7193_v27 = vand.u32 4294901760, %v6920_v22  ;;  %v2571_v47 = vand.u32 4294901760, %v2570_v6 }
 0x3da   :  { %v5206_v50 = vpack.c.bf16 %v2571_v47, %v2564_v49 }
 0x49d   :  { %v4362_v15 = vpop.f32.mrb[4].mxu0 }
 0x49e   :  { %v2405_v30 = vmul.f32 %v4362_v15, %v2401_v13  ;;  %v2378_v46 = vpop.f32.mrb[5].mxu0  ;;  %v6948_v13 = vsub.f32 %v6650_v16, %v2446_v54  ;;  %v2577_v54 = vsub.f32 %v6915_v32, %v7194_v52  ;;  %v2584_v16 = vsub.f32 %v6920_v22, %v7193_v27 }
 0x49f   :  { %v2404_v19 = vmul.f32 %v2400_v21, %v2378_v46 }
 0x4a0   :  { %v6931_v43 = vand.u32 4294901760, %v2405_v30  ;;  %v2578_v57 = vand.u32 4294901760, %v2577_v54  ;;  %v2585_v27 = vand.u32 4294901760, %v2584_v16 }
 0x4a1   :  { %v6938_v55 = vand.u32 4294901760, %v2404_v19  ;;  %v4365_v56 = vpop.f32.mrb[6].mxu0 }
 0x4a2   :  { %v6951_v21 = vsub.f32 %v2405_v30, %v6931_v43  ;;  %v2407_v8 = vmul.f32 %v4365_v56, %v2403_v9  ;;  %v2390_v59 = vpop.f32.mrb[7].mxu0  ;;  %v7195_v9 = vand.u32 4294901760, %v6948_v13  ;;  %v6984_v56 = vsub.f32 %v6673_v48, %v2452_v41 }
 0x4a3   :  { %v6954_v15 = vsub.f32 %v2404_v19, %v6938_v55  ;;  %v2406_v46 = vmul.f32 %v2402_v44, %v2390_v59  ;;  %v7196_v19 = vand.u32 4294901760, %v6943_v10  ;;  %v6979_v44 = vsub.f32 %v6668_v11, %v2449_v31 }
 0x4a4   :  { %v2517_v5 = vand.u32 4294901760, %v6951_v21  ;;  %v6957_v2 = vand.u32 4294901760, %v2407_v8  ;;  %v2598_v41 = vsub.f32 %v6948_v13, %v7195_v9  ;;  %v5210_v16 = vpack.c.bf16 %v2585_v27, %v2578_v57 }
 0x4a5   :  { %v6965_v45 = vand.u32 4294901760, %v2406_v46  ;;  %v2507_v30 = vand.u32 4294901760, %v6954_v15  ;;  %v2591_v48 = vsub.f32 %v6943_v10, %v7196_v19  ;;  %v2604_v49 = vand.u32 4294901760, %v6979_v44 }
 0x4a6   :  { %v2518_v28 = vsub.f32 %v6951_v21, %v2517_v5  ;;  %v6974_v6 = vsub.f32 %v2407_v8, %v6957_v2  ;;  %v2599_v19 = vand.u32 4294901760, %v2598_v41 }
 0x4a7   :  { %v6987_v59 = vsub.f32 %v2406_v46, %v6965_v45  ;;  %v2508_v39 = vsub.f32 %v6954_v15, %v2507_v30  ;;  %v2611_v46 = vand.u32 4294901760, %v6984_v56  ;;  %v2592_v9 = vand.u32 4294901760, %v2591_v48 }
 0x4a8   :  { %v7197_v8 = vand.u32 4294901760, %v6974_v6  ;;  %v2519_v31 = vand.u32 4294901760, %v2518_v28 }
 0x4a9   :  { %v2509_v52 = vand.u32 4294901760, %v2508_v39  ;;  %v2527_v11 = vand.u32 4294901760, %v6987_v59 }
 0x4aa   :  { %v2538_v47 = vsub.f32 %v6974_v6, %v7197_v8  ;;  %v2605_v8 = vsub.f32 %v6979_v44, %v2604_v49 }
 0x4ab   :  { %4398 = vmatprep.mubr.f32.mxu1 %v2509_v52  ;;  %v2528_v39 = vsub.f32 %v6987_v59, %v2527_v11  ;;  %v2612_v52 = vsub.f32 %v6984_v56, %v2611_v46 }
 0x4ac   :  { %4399 = vmatmul.mubr.f32.vlgmr.msra.gmra.mrb[4].mxu1 %v2519_v31  ;;  %v2539_v28 = vand.u32 4294901760, %v2538_v47  ;;  %v2606_v57 = vand.u32 4294901760, %v2605_v8 }
 0x4ad   :  { %5205 = vmatpush3.bf16.msra.mxu1 %v6833_v25  ;;  %v2529_v54 = vand.u32 4294901760, %v2528_v39  ;;  %v5214_v25 = vpack.c.bf16 %v2599_v19, %v2592_v9  ;;  %v2613_v27 = vand.u32 4294901760, %v2612_v52 }
 0x4ae   :  { %5207 = vmatprep.subr.bf16.mxu1 %v5206_v50 }
 0x4af   :  { %4401 = vmatprep.mubr.f32.mxu1 %v2529_v54  ;;  %v5218_v48 = vpack.c.bf16 %v2613_v27, %v2606_v57 }
 0x4b0   :  { %4402 = vmatmul.mubr.f32.gmra.mrb[6].mxu1 %v2539_v28 }
 0x4b1   :  { %5209 = vmatpush3.bf16.msra.mxu1 %v5206_v50  ;;  %4436 = vmatprep.mubr.f32.mxu1 %v6938_v55  ;;  %v5238_v50 = vpack.c.bf16 %v6902_v26, %v6897_v29  ;;  %v5314_v29 = vpack.c.bf16 %v2611_v46, %v2604_v49  ;;  %v7249_v26 = vand.u32 4294901760, %v6836_v3 }
 0x4b2   :  { %5211 = vmatprep.subr.bf16.mxu1 %v5210_v16 }
 0x4b5   :  { %5213 = vmatpush3.bf16.msra.mxu1 %v5210_v16 }
 0x4b6   :  { %5215 = vmatprep.subr.bf16.mxu1 %v5214_v25 }
 0x4b9   :  { %5217 = vmatpush3.bf16.msra.mxu1 %v5214_v25 }
 0x4ba   :  { %5219 = vmatprep.subr.bf16.mxu1 %v5218_v48 }
 0x4bd   :  { %5221 = vmatpush3.bf16.msra.mxu1 %v5218_v48 }
 0x4be   :  { %5223 = vmatprep.subr.bf16.mxu1 %v6854_v36 }
 0x4c1   :  { %5225 = vmatpush3.bf16.msra.mxu1 %v6854_v36  ;;  %v5242_v36 = vpack.c.bf16 %v6920_v22, %v6915_v32  ;;  %v7251_v32 = vand.u32 4294901760, %v6848_v61  ;;  %v7252_v22 = vand.u32 4294901760, %v6850_v12 }
 0x4c2   :  { %5227 = vmatprep.subr.bf16.mxu1 %v6874_v53 }
 0x4c5   :  { %5229 = vmatpush3.bf16.msra.mxu1 %v6874_v53  ;;  %v5246_v53 = vpack.c.bf16 %v6948_v13, %v6943_v10 }
 0x4c6   :  { %5231 = vmatprep.subr.bf16.mxu1 %v6876_v1 }
 0x4c9   :  { %5233 = vmatpush3.bf16.msra.mxu1 %v6876_v1  ;;  %v5250_v1 = vpack.c.bf16 %v6984_v56, %v6979_v44 }
 0x4ca   :  { %5235 = vmatprep.subr.bf16.mxu1 %v6880_v17 }
 0x4cc   :  { %4437 = vmatmul.mubr.f32.vlgmr.msra.gmra.mrb[4].mxu1 %v6931_v43 }
 0x4cd   :  { %4439 = vmatprep.mubr.f32.mxu1 %v6965_v45  ;;  %5237 = vmatpush3.bf16.msra.mxu1 %v6880_v17  ;;  %v5298_v17 = vpack.c.bf16 %v2555_v58, %v2548_v14  ;;  %v5306_v14 = vpack.c.bf16 %v7245_v18, %v7244_v60  ;;  %v7246_v58 = vand.u32 4294901760, %v6974_v6 }
 0x4ce   :  { %5239 = vmatprep.subr.bf16.mxu1 %v5238_v50 }
 0x4d0   :  { %4440 = vmatmul.mubr.f32.gmra.mrb[6].mxu1 %v6957_v2 }
 0x4d1   :  { %5241 = vmatpush3.bf16.msra.mxu1 %v5238_v50  ;;  %4474 = vmatprep.mubr.f32.mxu1 %v6954_v15 }
 0x4d2   :  { %5243 = vmatprep.subr.bf16.mxu1 %v5242_v36 }
 0x4d5   :  { %5245 = vmatpush3.bf16.msra.mxu1 %v5242_v36 }
 0x4d6   :  { %5247 = vmatprep.subr.bf16.mxu1 %v5246_v53 }
 0x4d9   :  { %5249 = vmatpush3.bf16.msra.mxu1 %v5246_v53 }
 0x4da   :  { %5251 = vmatprep.subr.bf16.mxu1 %v5250_v1 }
 0x4dd   :  { %5253 = vmatpush3.bf16.msra.mxu1 %v5250_v1 }
 0x4de   :  { %5255 = vmatprep.subr.bf16.mxu1 %v6884_v34 }
 0x4e1   :  { %5257 = vmatpush3.bf16.msra.mxu1 %v6884_v34  ;;  %v5302_v34 = vpack.c.bf16 %v2569_v0, %v2562_v51  ;;  %v7250_v51 = vand.u32 4294901760, %v6838_v20 }
 0x4e2   :  { %5259 = vmatprep.subr.bf16.mxu1 %v6888_v7 }
 0x4e3   :  { %v5318_v0 = vpack.c.bf16 %v7250_v51, %v7249_v26 }
 0x4e5   :  { %5261 = vmatpush3.bf16.msra.mxu1 %v6888_v7  ;;  %v7247_v7 = vand.u32 4294901760, %v6943_v10  ;;  %v5322_v10 = vpack.c.bf16 %v7252_v22, %v7251_v32 }
 0x4e6   :  { %5263 = vmatprep.subr.bf16.mxu1 %v6892_v40 }
 0x4e9   :  { %5265 = vmatpush3.bf16.msra.mxu1 %v6892_v40 }
 0x4ea   :  { %5267 = vmatprep.subr.bf16.mxu1 %v6632_v38 }
 0x4ec   :  { %4475 = vmatmul.mubr.f32.vlgmr.msra.gmra.mrb[4].mxu1 %v6951_v21  ;;  %v7254_v21 = vand.u32 4294901760, %v6861_v37 }
 0x4ed   :  { %4477 = vmatprep.mubr.f32.mxu1 %v6987_v59  ;;  %5269 = vmatpush3.bf16.msra.mxu1 %v6632_v38 }
 0x4ee   :  { %5271 = vmatprep.subr.bf16.mxu1 %v6640_v23 }
 0x4f0   :  { %4478 = vmatmul.mubr.f32.gmra.mrb[6].mxu1 %v6974_v6 }
 0x4f1   :  { %5273 = vmatpush3.bf16.msra.mxu1 %v6640_v23  ;;  %4512 = vmatprep.mubr.f32.mxu1 %v2507_v30 }
 0x4f2   :  { %5275 = vmatprep.subr.bf16.mxu1 %v6661_v4 }
 0x4f5   :  { %5277 = vmatpush3.bf16.msra.mxu1 %v6661_v4 }
 0x4f6   :  { %5279 = vmatprep.subr.bf16.mxu1 %v6681_v35 }
 0x4f9   :  { %5281 = vmatpush3.bf16.msra.mxu1 %v6681_v35 }
 0x4fa   :  { %5283 = vmatprep.subr.bf16.mxu1 %v6692_v42 }
 0x4fd   :  { %5285 = vmatpush3.bf16.msra.mxu1 %v6692_v42 }
 0x4fe   :  { %5287 = vmatprep.subr.bf16.mxu1 %v6791_v63 }
 0x501   :  { %5289 = vmatpush3.bf16.msra.mxu1 %v6791_v63 }
 0x502   :  { %5291 = vmatprep.subr.bf16.mxu1 %v6801_v33 }
 0x505   :  { %5293 = vmatpush3.bf16.msra.mxu1 %v6801_v33 }
 0x506   :  { %5295 = vmatprep.subr.bf16.mxu1 %v6823_v62 }
 0x509   :  { %5297 = vmatpush3.bf16.msra.mxu1 %v6823_v62 }
 0x50a   :  { %5299 = vmatprep.subr.bf16.mxu1 %v5298_v17 }
 0x50c   :  { %4513 = vmatmul.mubr.f32.vlgmr.msra.gmra.mrb[4].mxu1 %v2517_v5  ;;  %v7248_v5 = vand.u32 4294901760, %v6948_v13  ;;  %v7253_v13 = vand.u32 4294901760, %v6859_v24 }
 0x50d   :  { %4515 = vmatprep.mubr.f32.mxu1 %v2527_v11  ;;  %5301 = vmatpush3.bf16.msra.mxu1 %v5298_v17 }
 0x50e   :  { %5303 = vmatprep.subr.bf16.mxu1 %v5302_v34  ;;  %v5310_v40 = vpack.c.bf16 %v7248_v5, %v7247_v7  ;;  %v5326_v15 = vpack.c.bf16 %v7254_v21, %v7253_v13 }
 0x510   :  { %4516 = vmatmul.mubr.f32.gmra.mrb[6].mxu1 %v7246_v58 }
 0x511   :  { %5305 = vmatpush3.bf16.msra.mxu1 %v5302_v34  ;;  %4550 = vmatprep.mubr.f32.mxu1 %v6938_v55 }
 0x512   :  { %5307 = vmatprep.subr.bf16.mxu1 %v5306_v14 }
 0x515   :  { %5309 = vmatpush3.bf16.msra.mxu1 %v5306_v14 }
 0x516   :  { %5311 = vmatprep.subr.bf16.mxu1 %v5310_v40 }
 0x519   :  { %5313 = vmatpush3.bf16.msra.mxu1 %v5310_v40 }
 0x51a   :  { %5315 = vmatprep.subr.bf16.mxu1 %v5314_v29 }
 0x51d   :  { %5317 = vmatpush3.bf16.msra.mxu1 %v5314_v29 }
 0x51e   :  { %5319 = vmatprep.subr.bf16.mxu1 %v5318_v0 }
 0x521   :  { %5321 = vmatpush3.bf16.msra.mxu1 %v5318_v0 }
 0x522   :  { %5323 = vmatprep.subr.bf16.mxu1 %v5322_v10 }
 0x525   :  { %5325 = vmatpush3.bf16.msra.mxu1 %v5322_v10 }
 0x526   :  { %5327 = vmatprep.subr.bf16.mxu1 %v5326_v15 }
 0x529   :  { %5329 = vmatpush3.bf16.msra.mxu1 %v5326_v15 }
 0x52a   :  { %5331 = vmatprep.subr.bf16.mxu1 %v6632_v38 }
 0x52c   :  { %4551 = vmatmul.mubr.f32.vlgmr.msra.gmra.mrb[4].mxu1 %v6931_v43 }
 0x52d   :  { %4553 = vmatprep.mubr.f32.mxu1 %v6965_v45  ;;  %5333 = vmatpush3.bf16.msra.mxu1 %v6632_v38 }
 0x52e   :  { %5335 = vmatprep.subr.bf16.mxu1 %v6640_v23 }
 0x530   :  { %4554 = vmatmul.mubr.f32.gmra.mrb[6].mxu1 %v6957_v2 }
 0x531   :  { %5337 = vmatpush3.bf16.msra.mxu1 %v6640_v23  ;;  %4588 = vmatprep.mubr.f32.mxu1 %v6938_v55 }
 0x532   :  { %5339 = vmatprep.subr.bf16.mxu1 %v6661_v4 }
 0x535   :  { %5341 = vmatpush3.bf16.msra.mxu1 %v6661_v4 }
 0x536   :  { %5343 = vmatprep.subr.bf16.mxu1 %v6681_v35 }
 0x539   :  { %5345 = vmatpush3.bf16.msra.mxu1 %v6681_v35 }
 0x53a   :  { %5347 = vmatprep.subr.bf16.mxu1 %v6692_v42 }
 0x53d   :  { %5349 = vmatpush3.bf16.msra.mxu1 %v6692_v42 }
 0x53e   :  { %5351 = vmatprep.subr.bf16.mxu1 %v6791_v63 }
 0x541   :  { %5353 = vmatpush3.bf16.msra.mxu1 %v6791_v63 }
 0x542   :  { %5355 = vmatprep.subr.bf16.mxu1 %v6801_v33 }
 0x545   :  { %5357 = vmatpush3.bf16.msra.mxu1 %v6801_v33 }
 0x546   :  { %5359 = vmatprep.subr.bf16.mxu1 %v6823_v62 }
 0x549   :  { %5361 = vmatpush3.bf16.msra.mxu1 %v6823_v62 }
 0x54c   :  { %4589 = vmatmul.mubr.f32.vlgmr.msra.gmra.mrb[4].mxu1 %v6931_v43 }
 0x54d   :  { %4591 = vmatprep.mubr.f32.mxu1 %v6965_v45 }
 0x550   :  { %4592 = vmatmul.mubr.f32.gmra.mrb[6].mxu1 %v6957_v2 }
 0x61f   :  { %v4590_v38 = vpop.f32.mrb[4].mxu1 }
 0x620   :  { %3195 = vst [vmem:[%s7144_s7 + $0x8] sm:$0xff] %v4590_v38  ;;  %v3172_v42 = vpop.f32.mrb[5].mxu1 }
 0x621   :  { %3194 = vst [vmem:[%s7144_s7] sm:$0xff] %v3172_v42 }
 0x623   :  { %v4593_v23 = vpop.f32.mrb[6].mxu1 }
 0x624   :  { %3197 = vst [vmem:[%s7144_s7 + $0x18] sm:$0xff] %v4593_v23  ;;  %v3184_v4 = vpop.f32.mrb[7].mxu1 }
 0x625   :  { %3196 = vst [vmem:[%s7144_s7 + $0x10] sm:$0xff] %v3184_v4 }

</bundles_post_ra>
